<compile_context>
chip_gen: v7x
topology: tpu7x:2x2x1
jax: 0.10.0
libtpu: 0.0.40
codegen_flags: <defaults>
</compile_context>

<pallas_src>
from functools import partial

import jax
import jax.numpy as jnp
from jax import lax
from jax.experimental import pallas as pl
from jax.experimental.pallas import tpu as pltpu

KH = KW = 5   # LeNet 5x5 convolutions
POOL = 2      # 2x2 max pooling


# --------------------------------------------------------------------------
# Fused kernel: whole LeNet forward for one image per grid step
# --------------------------------------------------------------------------
def _make_fused_kernel(c1, s1, npos, c2, cd):
    """Build the fused kernel for static sizes.

    c1   : conv1 output channels
    s1   : Hp*Wp, spatial size of the pooled conv1 map
    npos : conv2 output positions (all pooled into a single 1x1)
    c2   : conv2 output channels (== flattened trunk width)
    cd   : MXU operand dtype (bf16 fast path / f32 check path)
    """

    def kernel(p1_ref, w1_ref, b1_ref, w2_ref, b2_ref,
               w3_ref, b3_ref, w4_ref, b4_ref, w5_ref, b5_ref, o_ref):
        f32 = jnp.float32

        # ---- block 1: conv as ONE GEMM over all 2x2 pool offsets ----------
        # p1_ref: (K1, 4*s1); columns enumerate (pool offset, pooled position).
        yt = jnp.dot(w1_ref[...], p1_ref[...],
                     preferred_element_type=f32)              # (c1, 4*s1)
        m = yt[:, 0:s1]
        for d in range(1, POOL * POOL):                       # 2x2 max-pool
            m = jnp.maximum(m, yt[:, d * s1:(d + 1) * s1])
        h1t = jnp.maximum(m + b1_ref[...], 0.0)               # bias+ReLU after max
        h1t = h1t.astype(cd)                                  # (c1, s1)

        # ---- block 2: conv via zero-scattered weights ----------------------
        # w2_ref[c]: (s1, npos*c2); output positions live on the lane axis.
        y2 = jnp.dot(h1t[0:1, :], w2_ref[0], preferred_element_type=f32)
        for c in range(1, c1):
            y2 = y2 + jnp.dot(h1t[c:c + 1, :], w2_ref[c],
                              preferred_element_type=f32)     # (1, npos*c2)
        m2 = y2[:, 0:c2]
        for p in range(1, npos):                              # 2x2 max-pool
            m2 = jnp.maximum(m2, y2[:, p * c2:(p + 1) * c2])
        h = jnp.maximum(m2 + b2_ref[...], 0.0)                # (1, c2) == flat input

        # ---- MLP head: Linear -> ReLU -> Linear -> ReLU -> Linear ----------
        h = jnp.dot(h.astype(cd), w3_ref[...],
                    preferred_element_type=f32) + b3_ref[...]
        h = jnp.maximum(h, 0.0)
        h = jnp.dot(h.astype(cd), w4_ref[...],
                    preferred_element_type=f32) + b4_ref[...]
        h = jnp.maximum(h, 0.0)
        o = jnp.dot(h.astype(cd), w5_ref[...],
                    preferred_element_type=f32) + b5_ref[...]
        o_ref[...] = o.astype(o_ref.dtype)                    # (1, out_dims)

    return kernel


# --------------------------------------------------------------------------
# JAX glue (pure indexing / padding, no arithmetic)
# --------------------------------------------------------------------------
def _conv1_patches_T(x_nhwc):
    """Transposed im2col for conv1, grouped by 2x2 pool offset.

    Returns (patches, (Hp, Wp)) with patches of shape
      (N, KH*KW*C, POOL*POOL*Hp*Wp) and
      patches[n, (kh*KW+kw)*C + c, d*Hp*Wp + i*Wp + j]
          = x[n, POOL*i + dh + kh, POOL*j + dw + kw, c],   d = dh*POOL + dw,
    i.e. rows follow w.reshape(KH*KW*C, Cout) and columns enumerate
    (pool offset, pooled output position).  Odd conv-output sizes are floored,
    matching PyTorch max-pool.
    """
    N, H, W, C = x_nhwc.shape
    Ho, Wo = H - KH + 1, W - KW + 1
    Hp, Wp = Ho // POOL, Wo // POOL
    dblocks = []
    for dh in range(POOL):
        for dw in range(POOL):
            taps = []
            for kh in range(KH):
                for kw in range(KW):
                    h0, w0 = dh + kh, dw + kw
                    taps.append(x_nhwc[:, h0:h0 + POOL * Hp:POOL,
                                       w0:w0 + POOL * Wp:POOL, :])  # (N,Hp,Wp,C)
            t = jnp.stack(taps, axis=1)                  # (N, KH*KW, Hp, Wp, C)
            t = jnp.transpose(t, (0, 1, 4, 2, 3))        # (N, KH*KW, C, Hp, Wp)
            dblocks.append(t.reshape(N, KH * KW * C, Hp * Wp))
    return jnp.concatenate(dblocks, axis=2), (Hp, Wp)


def _conv2_scattered_weights(w_hwio, hin, win):
    """Zero-scatter conv2 weights over its (hin, win) input grid.

    Returns (w_scat, (ho, wo)) with w_scat of shape (Cin, hin*win, ho*wo*Cout),
      w_scat[c, i*win + j, (p*wo+q)*Cout + d] = w[i-p, j-q, c, d]
    (zero where the tap falls outside the window), so that
      conv2(h)[p, q, d] = sum_c  h_T[c, :] @ w_scat[c, :, (p*wo+q)*Cout + d].
    Pure transpose/pad/stack -- exact, no arithmetic.
    """
    kh_, kw_, cin, cout = w_hwio.shape
    ho, wo = hin - kh_ + 1, win - kw_ + 1
    wt = jnp.transpose(w_hwio, (2, 0, 1, 3))             # (Cin, kh, kw, Cout)
    slabs = []
    for p in range(ho):
        for q in range(wo):
            pad = ((0, 0), (p, hin - kh_ - p), (q, win - kw_ - q), (0, 0))
            slabs.append(jnp.pad(wt, pad).reshape(cin, hin * win, cout))
    w_scat = jnp.stack(slabs, axis=2)                    # (Cin, hin*win, ho*wo, Cout)
    return w_scat.reshape(cin, hin * win, ho * wo * cout), (ho, wo)


# --------------------------------------------------------------------------
# Pallas-backed forward pass
# --------------------------------------------------------------------------
def lenet_forward(x_nchw, params, *, compute_dtype=jnp.bfloat16):
    (w1, b1), (w2, b2) = params["conv"]
    (w3, b3), (w4, b4), (w5, b5) = params["fc"]

    x = jnp.transpose(x_nchw, (0, 2, 3, 1))              # NCHW -> NHWC
    N = x.shape[0]

    p1t, (hp1, wp1) = _conv1_patches_T(x)                # (N, K1, 4*Hp*Wp)
    k1 = p1t.shape[1]
    s1 = hp1 * wp1
    c1 = w1.shape[-1]
    c2 = w2.shape[-1]
    w2s, (ho2, wo2) = _conv2_scattered_weights(w2, hp1, wp1)
    npos = ho2 * wo2
    n_out = w5.shape[1]

    # The fused kernel assumes the 2nd block pools down to 1x1 (true for LeNet
    # on 16x16 inputs) so the pooled conv2 row is already the flattened input.
    assert ho2 == POOL and wo2 == POOL, (ho2, wo2)
    assert w3.shape[0] == c2, (w3.shape, c2)

    cd = jnp.dtype(compute_dtype)
    p1t = p1t.astype(cd)
    w1t = w1.reshape(k1, c1).T.astype(cd)                # (c1, k1)
    b1c = b1.reshape(c1, 1).astype(jnp.float32)
    w2s = w2s.astype(cd)                                 # (c1, s1, npos*c2)
    b2r = b2.reshape(1, c2).astype(jnp.float32)
    w3c, w4c, w5c = (w.astype(cd) for w in (w3, w4, w5))
    b3r, b4r, b5r = (b.reshape(1, -1).astype(jnp.float32) for b in (b3, b4, b5))

    def full(a):   # whole-array block, constant index map -> stays VMEM-resident
        return pl.BlockSpec(a.shape, lambda n: (0,) * a.ndim)

    out = pl.pallas_call(
        _make_fused_kernel(c1, s1, npos, c2, cd),
        out_shape=jax.ShapeDtypeStruct((N, 1, n_out), jnp.float32),
        grid=(N,),
        in_specs=[
            pl.BlockSpec((None, k1, POOL * POOL * s1), lambda n: (n, 0, 0)),
            full(w1t), full(b1c), full(w2s), full(b2r),
            full(w3c), full(b3r), full(w4c), full(b4r), full(w5c), full(b5r),
        ],
        out_specs=pl.BlockSpec((None, 1, n_out), lambda n: (n, 0, 0)),
        compiler_params=pltpu.CompilerParams(
            # batch axis -> both TensorCores on v7x; harmless on v5e/v6e
            dimension_semantics=("parallel",),
            # allow XLA to fuse the im2col producer into the patches operand
            allow_input_fusion=[True] + [False] * 10,
        ),
    )(p1t, w1t, b1c, w2s, b2r, w3c, b3r, w4c, b4r, w5c, b5r)
    # Final (1, n_out) store per image is a masked vst (lane width 10 < 128);
    # negligible at this size, so the logits are not padded to 128 lanes.
    return out.reshape(N, n_out)


# --------------------------------------------------------------------------
# Pure-JAX reference (correctness check only; mirrors the PyTorch module)
# --------------------------------------------------------------------------
def reference_forward(x_nchw, params):
    x = jnp.transpose(x_nchw, (0, 2, 3, 1))
    for w, b in params["conv"]:
        y = lax.conv_general_dilated(
            x, w, window_strides=(1, 1), padding="VALID",
            dimension_numbers=("NHWC", "HWIO", "NHWC"),
            precision=lax.Precision.HIGHEST)
        y = jax.nn.relu(y + b.reshape(1, 1, 1, -1))
        x = lax.reduce_window(y, -jnp.inf, lax.max,
                              (1, POOL, POOL, 1), (1, POOL, POOL, 1), "VALID")
    xf = jnp.transpose(x, (0, 3, 1, 2)).reshape(x.shape[0], -1)  # PyTorch view order
    (w1, b1), (w2, b2), (w3, b3) = params["fc"]
    h = jax.nn.relu(jnp.dot(xf, w1, precision=lax.Precision.HIGHEST) + b1)
    h = jax.nn.relu(jnp.dot(h, w2, precision=lax.Precision.HIGHEST) + b2)
    return jnp.dot(h, w3, precision=lax.Precision.HIGHEST) + b3


# --------------------------------------------------------------------------
# Deterministic parameter init + driver
# --------------------------------------------------------------------------
def init_params(key, in_channels, conv_channels, flat_dim, hidden, out_dims):
    n_keys = 2 * len(conv_channels) + 2 * (len(hidden) + 1)
    keys = iter(jax.random.split(key, n_keys))

    def nrm(shape, scale=0.1):
        return scale * jax.random.normal(next(keys), shape, jnp.float32)

    conv = []
    cin = in_channels
    for cout in conv_channels:
        conv.append((nrm((KH, KW, cin, cout)), nrm((cout,))))
        cin = cout

    fc = []
    din = flat_dim
    for dout in list(hidden) + [out_dims]:
        fc.append((nrm((din, dout)), nrm((dout,))))
        din = dout
    return {"conv": conv, "fc": fc}


if __name__ == "__main__":
    # LeNet config: input (C=4, H=16, W=16), conv_channels=[6, 16],
    # hidden_neurons=[120, 84], output_dims=10.
    batch, in_c, hw = 2, 4, 16
    conv_channels = [6, 16]
    hidden = [120, 84]
    out_dims = 10

    # Spatial trace: 16 -(conv5)-> 12 -(pool)-> 6 -(conv5)-> 2 -(pool)-> 1
    flat_dim = conv_channels[-1] * 1 * 1

    root = jax.random.PRNGKey(0)
    kx, kp = jax.random.split(root)
    x = jax.random.normal(kx, (batch, in_c, hw, hw), jnp.float32)   # NCHW input
    params = init_params(kp, in_c, conv_channels, flat_dim, hidden, out_dims)

    # Optimized path: bf16 MXU operands, f32 accumulation / elementwise.
    out = jax.block_until_ready(jax.jit(lenet_forward)(x, params))
    assert out.shape == (batch, out_dims), out.shape

    ref = jax.block_until_ready(reference_forward(x, params))
    # bf16 operands vs f32 reference -> slightly loosened tolerance.
    assert jnp.allclose(out, ref, rtol=2e-2, atol=2e-2), jnp.max(jnp.abs(out - ref))

    # Structural check of the fused kernel itself with f32 MXU operands.
    out32 = jax.block_until_ready(
        jax.jit(partial(lenet_forward, compute_dtype=jnp.float32))(x, params))
    assert jnp.allclose(out32, ref, rtol=5e-3, atol=5e-3), jnp.max(jnp.abs(out32 - ref))

    print("KERNEL_OK")
</pallas_src>

<mosaic_0001>
module attributes {stable_mosaic.version = 11 : i64} {
  func.func @kernel(%arg0: i32, %arg1: memref<1x100x144xbf16, #tpu.memory_space<vmem>>, %arg2: memref<6x100xbf16, #tpu.memory_space<vmem>>, %arg3: memref<6x1xf32, #tpu.memory_space<vmem>>, %arg4: memref<6x36x64xbf16, #tpu.memory_space<vmem>>, %arg5: memref<1x16xf32, #tpu.memory_space<vmem>>, %arg6: memref<16x120xbf16, #tpu.memory_space<vmem>>, %arg7: memref<1x120xf32, #tpu.memory_space<vmem>>, %arg8: memref<120x84xbf16, #tpu.memory_space<vmem>>, %arg9: memref<1x84xf32, #tpu.memory_space<vmem>>, %arg10: memref<84x10xbf16, #tpu.memory_space<vmem>>, %arg11: memref<1x10xf32, #tpu.memory_space<vmem>>, %arg12: memref<1x1x10xf32, #tpu.memory_space<vmem>>) attributes {dimension_semantics = [#tpu.dimension_semantics<parallel>], iteration_bounds = array<i64: 2>, scalar_prefetch = 0 : i64, scratch_operands = 0 : i64, tpu.core_type = #tpu.core_type<tc>, window_params = [{transform_indices = @transform_0, window_bounds = array<i64: 1, 100, 144>}, {pipeline_mode = #tpu.pipeline_mode<synchronous>, transform_indices = @transform_1, window_bounds = array<i64: 6, 100>}, {pipeline_mode = #tpu.pipeline_mode<synchronous>, transform_indices = @transform_2, window_bounds = array<i64: 6, 1>}, {pipeline_mode = #tpu.pipeline_mode<synchronous>, transform_indices = @transform_3, window_bounds = array<i64: 6, 36, 64>}, {pipeline_mode = #tpu.pipeline_mode<synchronous>, transform_indices = @transform_4, window_bounds = array<i64: 1, 16>}, {pipeline_mode = #tpu.pipeline_mode<synchronous>, transform_indices = @transform_5, window_bounds = array<i64: 16, 120>}, {pipeline_mode = #tpu.pipeline_mode<synchronous>, transform_indices = @transform_6, window_bounds = array<i64: 1, 120>}, {pipeline_mode = #tpu.pipeline_mode<synchronous>, transform_indices = @transform_7, window_bounds = array<i64: 120, 84>}, {pipeline_mode = #tpu.pipeline_mode<synchronous>, transform_indices = @transform_8, window_bounds = array<i64: 1, 84>}, {pipeline_mode = #tpu.pipeline_mode<synchronous>, transform_indices = @transform_9, window_bounds = array<i64: 84, 10>}, {pipeline_mode = #tpu.pipeline_mode<synchronous>, transform_indices = @transform_10, window_bounds = array<i64: 1, 10>}, {transform_indices = @transform_11, window_bounds = array<i64: 1, 1, 10>}]} {
    %c0 = arith.constant 0 : index
    %c0_0 = arith.constant 0 : index
    %0 = vector.load %arg2[%c0, %c0_0] : memref<6x100xbf16, #tpu.memory_space<vmem>>, vector<6x100xbf16>
    %c0_1 = arith.constant 0 : index
    %c0_2 = arith.constant 0 : index
    %c0_3 = arith.constant 0 : index
    %1 = vector.load %arg1[%c0_1, %c0_2, %c0_3] : memref<1x100x144xbf16, #tpu.memory_space<vmem>>, vector<1x100x144xbf16>
    %2 = vector.shape_cast %1 : vector<1x100x144xbf16> to vector<100x144xbf16>
    %cst = arith.constant dense<0.000000e+00> : vector<6x144xf32>
    %3 = tpu.matmul %0, %2, %cst {dimension_numbers = #tpu.dot_dimension_numbers<[1], [0], [0], [1], [0, 0, 1, 1], [], []>} : vector<6x100xbf16>, vector<100x144xbf16>, vector<6x144xf32> -> vector<6x144xf32>
    %4 = vector.extract_strided_slice %3 {offsets = [0, 0], sizes = [6, 36], strides = [1, 1]} : vector<6x144xf32> to vector<6x36xf32>
    %5 = vector.extract_strided_slice %3 {offsets = [0, 36], sizes = [6, 36], strides = [1, 1]} : vector<6x144xf32> to vector<6x36xf32>
    %6 = arith.maximumf %4, %5 : vector<6x36xf32>
    %7 = vector.extract_strided_slice %3 {offsets = [0, 72], sizes = [6, 36], strides = [1, 1]} : vector<6x144xf32> to vector<6x36xf32>
    %8 = arith.maximumf %6, %7 : vector<6x36xf32>
    %9 = vector.extract_strided_slice %3 {offsets = [0, 108], sizes = [6, 36], strides = [1, 1]} : vector<6x144xf32> to vector<6x36xf32>
    %10 = arith.maximumf %8, %9 : vector<6x36xf32>
    %c0_4 = arith.constant 0 : index
    %c0_5 = arith.constant 0 : index
    %11 = vector.load %arg3[%c0_4, %c0_5] : memref<6x1xf32, #tpu.memory_space<vmem>>, vector<6x1xf32>
    %12 = vector.broadcast %11 : vector<6x1xf32> to vector<6x36xf32>
    %13 = arith.addf %10, %12 : vector<6x36xf32>
    %cst_6 = arith.constant 0.000000e+00 : f32
    %14 = vector.broadcast %cst_6 : f32 to vector<6x36xf32>
    %15 = arith.maximumf %13, %14 : vector<6x36xf32>
    %16 = arith.truncf %15 : vector<6x36xf32> to vector<6x36xbf16>
    %17 = vector.extract_strided_slice %16 {offsets = [0, 0], sizes = [1, 36], strides = [1, 1]} : vector<6x36xbf16> to vector<1x36xbf16>
    %c0_7 = arith.constant 0 : index
    %c0_8 = arith.constant 0 : index
    %c0_9 = arith.constant 0 : index
    %18 = vector.load %arg4[%c0_7, %c0_8, %c0_9] : memref<6x36x64xbf16, #tpu.memory_space<vmem>>, vector<1x36x64xbf16>
    %19 = vector.shape_cast %18 : vector<1x36x64xbf16> to vector<36x64xbf16>
    %cst_10 = arith.constant dense<0.000000e+00> : vector<1x64xf32>
    %20 = tpu.matmul %17, %19, %cst_10 {dimension_numbers = #tpu.dot_dimension_numbers<[1], [0], [0], [1], [0, 0, 1, 1], [], []>} : vector<1x36xbf16>, vector<36x64xbf16>, vector<1x64xf32> -> vector<1x64xf32>
    %21 = vector.extract_strided_slice %16 {offsets = [1, 0], sizes = [1, 36], strides = [1, 1]} : vector<6x36xbf16> to vector<1x36xbf16>
    %c1 = arith.constant 1 : index
    %c0_11 = arith.constant 0 : index
    %c0_12 = arith.constant 0 : index
    %22 = vector.load %arg4[%c1, %c0_11, %c0_12] : memref<6x36x64xbf16, #tpu.memory_space<vmem>>, vector<1x36x64xbf16>
    %23 = vector.shape_cast %22 : vector<1x36x64xbf16> to vector<36x64xbf16>
    %cst_13 = arith.constant dense<0.000000e+00> : vector<1x64xf32>
    %24 = tpu.matmul %21, %23, %cst_13 {dimension_numbers = #tpu.dot_dimension_numbers<[1], [0], [0], [1], [0, 0, 1, 1], [], []>} : vector<1x36xbf16>, vector<36x64xbf16>, vector<1x64xf32> -> vector<1x64xf32>
    %25 = arith.addf %20, %24 : vector<1x64xf32>
    %26 = vector.extract_strided_slice %16 {offsets = [2, 0], sizes = [1, 36], strides = [1, 1]} : vector<6x36xbf16> to vector<1x36xbf16>
    %c2 = arith.constant 2 : index
    %c0_14 = arith.constant 0 : index
    %c0_15 = arith.constant 0 : index
    %27 = vector.load %arg4[%c2, %c0_14, %c0_15] : memref<6x36x64xbf16, #tpu.memory_space<vmem>>, vector<1x36x64xbf16>
    %28 = vector.shape_cast %27 : vector<1x36x64xbf16> to vector<36x64xbf16>
    %cst_16 = arith.constant dense<0.000000e+00> : vector<1x64xf32>
    %29 = tpu.matmul %26, %28, %cst_16 {dimension_numbers = #tpu.dot_dimension_numbers<[1], [0], [0], [1], [0, 0, 1, 1], [], []>} : vector<1x36xbf16>, vector<36x64xbf16>, vector<1x64xf32> -> vector<1x64xf32>
    %30 = arith.addf %25, %29 : vector<1x64xf32>
    %31 = vector.extract_strided_slice %16 {offsets = [3, 0], sizes = [1, 36], strides = [1, 1]} : vector<6x36xbf16> to vector<1x36xbf16>
    %c3 = arith.constant 3 : index
    %c0_17 = arith.constant 0 : index
    %c0_18 = arith.constant 0 : index
    %32 = vector.load %arg4[%c3, %c0_17, %c0_18] : memref<6x36x64xbf16, #tpu.memory_space<vmem>>, vector<1x36x64xbf16>
    %33 = vector.shape_cast %32 : vector<1x36x64xbf16> to vector<36x64xbf16>
    %cst_19 = arith.constant dense<0.000000e+00> : vector<1x64xf32>
    %34 = tpu.matmul %31, %33, %cst_19 {dimension_numbers = #tpu.dot_dimension_numbers<[1], [0], [0], [1], [0, 0, 1, 1], [], []>} : vector<1x36xbf16>, vector<36x64xbf16>, vector<1x64xf32> -> vector<1x64xf32>
    %35 = arith.addf %30, %34 : vector<1x64xf32>
    %36 = vector.extract_strided_slice %16 {offsets = [4, 0], sizes = [1, 36], strides = [1, 1]} : vector<6x36xbf16> to vector<1x36xbf16>
    %c4 = arith.constant 4 : index
    %c0_20 = arith.constant 0 : index
    %c0_21 = arith.constant 0 : index
    %37 = vector.load %arg4[%c4, %c0_20, %c0_21] : memref<6x36x64xbf16, #tpu.memory_space<vmem>>, vector<1x36x64xbf16>
    %38 = vector.shape_cast %37 : vector<1x36x64xbf16> to vector<36x64xbf16>
    %cst_22 = arith.constant dense<0.000000e+00> : vector<1x64xf32>
    %39 = tpu.matmul %36, %38, %cst_22 {dimension_numbers = #tpu.dot_dimension_numbers<[1], [0], [0], [1], [0, 0, 1, 1], [], []>} : vector<1x36xbf16>, vector<36x64xbf16>, vector<1x64xf32> -> vector<1x64xf32>
    %40 = arith.addf %35, %39 : vector<1x64xf32>
    %41 = vector.extract_strided_slice %16 {offsets = [5, 0], sizes = [1, 36], strides = [1, 1]} : vector<6x36xbf16> to vector<1x36xbf16>
    %c5 = arith.constant 5 : index
    %c0_23 = arith.constant 0 : index
    %c0_24 = arith.constant 0 : index
    %42 = vector.load %arg4[%c5, %c0_23, %c0_24] : memref<6x36x64xbf16, #tpu.memory_space<vmem>>, vector<1x36x64xbf16>
    %43 = vector.shape_cast %42 : vector<1x36x64xbf16> to vector<36x64xbf16>
    %cst_25 = arith.constant dense<0.000000e+00> : vector<1x64xf32>
    %44 = tpu.matmul %41, %43, %cst_25 {dimension_numbers = #tpu.dot_dimension_numbers<[1], [0], [0], [1], [0, 0, 1, 1], [], []>} : vector<1x36xbf16>, vector<36x64xbf16>, vector<1x64xf32> -> vector<1x64xf32>
    %45 = arith.addf %40, %44 : vector<1x64xf32>
    %46 = vector.extract_strided_slice %45 {offsets = [0, 0], sizes = [1, 16], strides = [1, 1]} : vector<1x64xf32> to vector<1x16xf32>
    %47 = vector.extract_strided_slice %45 {offsets = [0, 16], sizes = [1, 16], strides = [1, 1]} : vector<1x64xf32> to vector<1x16xf32>
    %48 = arith.maximumf %46, %47 : vector<1x16xf32>
    %49 = vector.extract_strided_slice %45 {offsets = [0, 32], sizes = [1, 16], strides = [1, 1]} : vector<1x64xf32> to vector<1x16xf32>
    %50 = arith.maximumf %48, %49 : vector<1x16xf32>
    %51 = vector.extract_strided_slice %45 {offsets = [0, 48], sizes = [1, 16], strides = [1, 1]} : vector<1x64xf32> to vector<1x16xf32>
    %52 = arith.maximumf %50, %51 : vector<1x16xf32>
    %c0_26 = arith.constant 0 : index
    %c0_27 = arith.constant 0 : index
    %53 = vector.load %arg5[%c0_26, %c0_27] : memref<1x16xf32, #tpu.memory_space<vmem>>, vector<1x16xf32>
    %54 = arith.addf %52, %53 : vector<1x16xf32>
    %cst_28 = arith.constant 0.000000e+00 : f32
    %55 = vector.broadcast %cst_28 : f32 to vector<1x16xf32>
    %56 = arith.maximumf %54, %55 : vector<1x16xf32>
    %57 = arith.truncf %56 : vector<1x16xf32> to vector<1x16xbf16>
    %c0_29 = arith.constant 0 : index
    %c0_30 = arith.constant 0 : index
    %58 = vector.load %arg6[%c0_29, %c0_30] : memref<16x120xbf16, #tpu.memory_space<vmem>>, vector<16x120xbf16>
    %cst_31 = arith.constant dense<0.000000e+00> : vector<1x120xf32>
    %59 = tpu.matmul %57, %58, %cst_31 {dimension_numbers = #tpu.dot_dimension_numbers<[1], [0], [0], [1], [0, 0, 1, 1], [], []>} : vector<1x16xbf16>, vector<16x120xbf16>, vector<1x120xf32> -> vector<1x120xf32>
    %c0_32 = arith.constant 0 : index
    %c0_33 = arith.constant 0 : index
    %60 = vector.load %arg7[%c0_32, %c0_33] : memref<1x120xf32, #tpu.memory_space<vmem>>, vector<1x120xf32>
    %61 = arith.addf %59, %60 : vector<1x120xf32>
    %cst_34 = arith.constant 0.000000e+00 : f32
    %62 = vector.broadcast %cst_34 : f32 to vector<1x120xf32>
    %63 = arith.maximumf %61, %62 : vector<1x120xf32>
    %64 = arith.truncf %63 : vector<1x120xf32> to vector<1x120xbf16>
    %c0_35 = arith.constant 0 : index
    %c0_36 = arith.constant 0 : index
    %65 = vector.load %arg8[%c0_35, %c0_36] : memref<120x84xbf16, #tpu.memory_space<vmem>>, vector<120x84xbf16>
    %cst_37 = arith.constant dense<0.000000e+00> : vector<1x84xf32>
    %66 = tpu.matmul %64, %65, %cst_37 {dimension_numbers = #tpu.dot_dimension_numbers<[1], [0], [0], [1], [0, 0, 1, 1], [], []>} : vector<1x120xbf16>, vector<120x84xbf16>, vector<1x84xf32> -> vector<1x84xf32>
    %c0_38 = arith.constant 0 : index
    %c0_39 = arith.constant 0 : index
    %67 = vector.load %arg9[%c0_38, %c0_39] : memref<1x84xf32, #tpu.memory_space<vmem>>, vector<1x84xf32>
    %68 = arith.addf %66, %67 : vector<1x84xf32>
    %cst_40 = arith.constant 0.000000e+00 : f32
    %69 = vector.broadcast %cst_40 : f32 to vector<1x84xf32>
    %70 = arith.maximumf %68, %69 : vector<1x84xf32>
    %71 = arith.truncf %70 : vector<1x84xf32> to vector<1x84xbf16>
    %c0_41 = arith.constant 0 : index
    %c0_42 = arith.constant 0 : index
    %72 = vector.load %arg10[%c0_41, %c0_42] : memref<84x10xbf16, #tpu.memory_space<vmem>>, vector<84x10xbf16>
    %cst_43 = arith.constant dense<0.000000e+00> : vector<1x10xf32>
    %73 = tpu.matmul %71, %72, %cst_43 {dimension_numbers = #tpu.dot_dimension_numbers<[1], [0], [0], [1], [0, 0, 1, 1], [], []>} : vector<1x84xbf16>, vector<84x10xbf16>, vector<1x10xf32> -> vector<1x10xf32>
    %c0_44 = arith.constant 0 : index
    %c0_45 = arith.constant 0 : index
    %74 = vector.load %arg11[%c0_44, %c0_45] : memref<1x10xf32, #tpu.memory_space<vmem>>, vector<1x10xf32>
    %75 = arith.addf %73, %74 : vector<1x10xf32>
    %c0_46 = arith.constant 0 : index
    %c0_47 = arith.constant 0 : index
    %c0_48 = arith.constant 0 : index
    %76 = vector.load %arg12[%c0_46, %c0_47, %c0_48] : memref<1x1x10xf32, #tpu.memory_space<vmem>>, vector<1x1x10xf32>
    %77 = vector.shape_cast %76 : vector<1x1x10xf32> to vector<1x10xf32>
    %78 = vector.shape_cast %75 : vector<1x10xf32> to vector<1x1x10xf32>
    tpu.vector_store %arg12[%c0_46, %c0_47, %c0_48], %78 {strides = array<i32>} : memref<1x1x10xf32, #tpu.memory_space<vmem>>, vector<1x1x10xf32>,
    return
  }
  func.func @transform_0(%arg0: i32) -> (i32, i32, i32) {
    %c0_i32 = arith.constant 0 : i32
    %c0_i32_0 = arith.constant 0 : i32
    %c0_i32_1 = arith.constant 0 : i32
    return %arg0, %c0_i32, %c0_i32_0 : i32, i32, i32
  }
  func.func @transform_1(%arg0: i32) -> (i32, i32) {
    %c0_i32 = arith.constant 0 : i32
    %c0_i32_0 = arith.constant 0 : i32
    %c0_i32_1 = arith.constant 0 : i32
    return %c0_i32, %c0_i32_0 : i32, i32
  }
  func.func @transform_2(%arg0: i32) -> (i32, i32) {
    %c0_i32 = arith.constant 0 : i32
    %c0_i32_0 = arith.constant 0 : i32
    %c0_i32_1 = arith.constant 0 : i32
    return %c0_i32, %c0_i32_0 : i32, i32
  }
  func.func @transform_3(%arg0: i32) -> (i32, i32, i32) {
    %c0_i32 = arith.constant 0 : i32
    %c0_i32_0 = arith.constant 0 : i32
    %c0_i32_1 = arith.constant 0 : i32
    %c0_i32_2 = arith.constant 0 : i32
    return %c0_i32, %c0_i32_0, %c0_i32_1 : i32, i32, i32
  }
  func.func @transform_4(%arg0: i32) -> (i32, i32) {
    %c0_i32 = arith.constant 0 : i32
    %c0_i32_0 = arith.constant 0 : i32
    %c0_i32_1 = arith.constant 0 : i32
    return %c0_i32, %c0_i32_0 : i32, i32
  }
  func.func @transform_5(%arg0: i32) -> (i32, i32) {
    %c0_i32 = arith.constant 0 : i32
    %c0_i32_0 = arith.constant 0 : i32
    %c0_i32_1 = arith.constant 0 : i32
    return %c0_i32, %c0_i32_0 : i32, i32
  }
  func.func @transform_6(%arg0: i32) -> (i32, i32) {
    %c0_i32 = arith.constant 0 : i32
    %c0_i32_0 = arith.constant 0 : i32
    %c0_i32_1 = arith.constant 0 : i32
    return %c0_i32, %c0_i32_0 : i32, i32
  }
  func.func @transform_7(%arg0: i32) -> (i32, i32) {
    %c0_i32 = arith.constant 0 : i32
    %c0_i32_0 = arith.constant 0 : i32
    %c0_i32_1 = arith.constant 0 : i32
    return %c0_i32, %c0_i32_0 : i32, i32
  }
  func.func @transform_8(%arg0: i32) -> (i32, i32) {
    %c0_i32 = arith.constant 0 : i32
    %c0_i32_0 = arith.constant 0 : i32
    %c0_i32_1 = arith.constant 0 : i32
    return %c0_i32, %c0_i32_0 : i32, i32
  }
  func.func @transform_9(%arg0: i32) -> (i32, i32) {
    %c0_i32 = arith.constant 0 : i32
    %c0_i32_0 = arith.constant 0 : i32
    %c0_i32_1 = arith.constant 0 : i32
    return %c0_i32, %c0_i32_0 : i32, i32
  }
  func.func @transform_10(%arg0: i32) -> (i32, i32) {
    %c0_i32 = arith.constant 0 : i32
    %c0_i32_0 = arith.constant 0 : i32
    %c0_i32_1 = arith.constant 0 : i32
    return %c0_i32, %c0_i32_0 : i32, i32
  }
  func.func @transform_11(%arg0: i32) -> (i32, i32, i32) {
    %c0_i32 = arith.constant 0 : i32
    %c0_i32_0 = arith.constant 0 : i32
    %c0_i32_1 = arith.constant 0 : i32
    return %arg0, %c0_i32, %c0_i32_0 : i32, i32, i32
  }
}

</mosaic_0001>

<bundles_post_ra>
// kernel: lenet_forward.2
= control target key start
LH: loop header
LB: loop body
LE: loop exit
PB: predicated region body
PF: predicated region fallthrough
CT: control target
= control target key end

     0   :  { %s5673_s0 = inlined_call_operand.vmem [shape: bf16[6,100], index: 0, kind: input, shape index: {}]   ;;  %s5674_s1 = inlined_call_operand.vmem [shape: f32[6,1], index: 1, kind: input, shape index: {}]   ;;  %s5675_s2 = inlined_call_operand.vmem [shape: bf16[6,36,64], index: 2, kind: input, shape index: {}]   ;;  %s5676_s3 = inlined_call_operand.vmem [shape: f32[1,16], index: 3, kind: input, shape index: {}]   ;;  %s5677_s4 = inlined_call_operand.vmem [shape: bf16[16,120], index: 4, kind: input, shape index: {}]   ;;  %s5678_s5 = inlined_call_operand.vmem [shape: f32[1,120], index: 5, kind: input, shape index: {}]   ;;  %s5679_s6 = inlined_call_operand.vmem [shape: bf16[120,84], index: 6, kind: input, shape index: {}]   ;;  %s5680_s7 = inlined_call_operand.vmem [shape: f32[1,84], index: 7, kind: input, shape index: {}]   ;;  %s5681_s8 = inlined_call_operand.vmem [shape: bf16[84,10], index: 8, kind: input, shape index: {}]   ;;  %s5682_s9 = inlined_call_operand.vmem [shape: f32[1,10], index: 9, kind: input, shape index: {}]   ;;  %s5683_s10 = inlined_call_operand.vmem [shape: bf16[2,100,36], index: 10, kind: input, shape index: {}]   ;;  %s5684_s11 = inlined_call_operand.<no memory space> [shape: bf16[], index: 11, kind: input, shape index: {}]   ;;  %s5685_s12 = inlined_call_operand.vmem [shape: bf16[2,100,36], index: 12, kind: input, shape index: {}]   ;;  %s5686_s13 = inlined_call_operand.vmem [shape: bf16[2,100,36], index: 13, kind: input, shape index: {}]   ;;  %s5687_s14 = inlined_call_operand.vmem [shape: bf16[2,100,36], index: 14, kind: input, shape index: {}]   ;;  %s5688_s15 = inlined_call_operand.hbm [shape: f32[2,1,10], index: 15, kind: output, shape index: {}]  }
   0x1   :  { %5691 = sst [smem:[#allocation26_spill]] %s5673_s0  ;;  %v20_v0 = vstv %s5684_s11 }
   0x2   :  { %5692 = sst [smem:[#allocation27_spill]] %s5674_s1  ;;  %v4621_v1 = vunpack.i.l.bf16 %v20_v0 }
   0x3   :  { %5693 = sst [smem:[#allocation28_spill]] %s5686_s13 }
   0x4   :  { %40 = vsyncpa [#allocation23], 0 }
   0x5   :  { %42 = vsyncpa [#allocation23 + $0x1], 0  ;;  %s4623_s20 = smov 0   ;;  %s4625_s21 = smov 0  }
   0x6   :  { %s4627_s22 = smov 0   ;;  %s4629_s23 = smov 0  }
   0x7 LB: > { %s4644_s11 = sadd.s32 4294967295, %s4523_s23   ;;  %s3853_s24 = sadd.s32 4294967294, %s4523_s23   ;;  %s4523_s23 = sphi %s4629_s23, %s5703_s23   ;;  %s4519_s22 = sphi %s4627_s22, %s5702_s22   ;;  %s4515_s21 = sphi %s4625_s21, %s5701_s21   ;;  %s4511_s20 = sphi %s4623_s20, %s5700_s20  }
   0x8   : > { %s4648_s25 = sadd.s32 1, %s4523_s23   ;;  %s381_s26 = sadd.s32 1, %s4519_s22 }
   0x9   : > { %s378_s27 = ssub.s32 %s4523_s23, %s4648_s25  ;;  %p391_p0 = scmp.ne.s32.totalorder %s4519_s22, %s4515_s21 }
   0xa   : > { %p379_p1 = scmp.eq.s32.totalorder %s378_s27, 0  ;;  %p392_p2 = scmp.eq.s32.totalorder %s4644_s11, 1 }
   0xb   : > { %p397_p3 = scmp.ne.s32.totalorder %s4515_s21, %s4511_s20  ;;  %p398_p4 = scmp.eq.s32.totalorder %s3853_s24, 1 }
   0xc   : > { %s4659_s28 = scalar_select %p379_p1, %s4519_s22, %s381_s26  }
   0xd   : > { %p4661_p5 = por %p392_p2, %p391_p0  ;;  %p4665_p6 = por %p398_p4, %p397_p3 }
   0xe   : > { %p3856_p7 = scmp.ge.s32.totalorder %s4523_s23, 1  ;;  %p505_p8 = scmp.lt.s32.totalorder %s4523_s23, 3 }
  0x10   : > { %p506_p9 = pnand %p3856_p7, %p505_p8 }
  0x12   : > { %509 = sbr.rel (%p506_p9) target bundleno = 1656 (0x678), region = 76 }
  0x19   : > { %p586_p10 = scmp.lt.s32.totalorder %s4644_s11, 1  ;;  %v650_v2 = vlaneseq  ;;  %s5696_s13 = sld [smem:[#allocation28_spill]]  ;;  %vm2966_vm6 = vcmask 1041408   ;;  %vm2962_vm7 = vcmask 818176   ;;  %vm4530_vm8 = vmmov 0  }
  0x1a   : > { %s4525_s26 = smov 36   ;;  %s4526_s27 = smov 72   ;;  %vm3028_vm9 = vcmask 162816   ;;  %vm3070_vm10 = vcmask 293888   ;;  %vm3480_vm11 = vcmask 130048   ;;  %vm3591_vm12 = vcmask 1043456  }
  0x1b   : > { %s587_s16 = scalar_select %p586_p10, %s4644_s11, 1  ;;  %v4674_v3 = vand.u32 127, %v650_v2  ;;  %vm3587_vm13 = vcmask 982016   ;;  %vm3682_vm14 = vcmask 687104   ;;  %vm3729_vm15 = vcmask 73728  }
  0x1c   : > { %s5689_s18 = smov 108   ;;  %s5698_s1 = sld [smem:[#allocation27_spill]] }
  0x1d   : > { %s4676_s17 = smul.u32 52, %s587_s16  ;;  %v4679_v4 = vadd.s32 128, %v4674_v3  ;;  %vm719_vm0 = vcmp.lt.s32.totalorder %v4674_v3, 92  ;;  %vm688_vm2 = vcmp.lt.s32.totalorder %v4674_v3, 56  ;;  %vm657_vm3 = vcmp.lt.s32.totalorder %v4674_v3, 20  ;;  %s5699_s0 = sld [smem:[#allocation26_spill]] }
  0x1e   : > { %vm743_vm4 = vcmp.lt.s32.totalorder %v4674_v3, 36  ;;  %v4529_v3 = vmov 0  }
  0x1f   : > { %s4685_s24 = scalar_lea.vmem %s5696_s13, %s4676_s17  ;;  %s4692_s16 = scalar_lea.vmem %s5685_s12, %s4676_s17  ;;  %vm653_vm1 = vcmp.lt.s32.totalorder %v4679_v4, 164  ;;  %3005 = vmatprep.mubr.bf16.mxu0 %v4529_v3  ;;  %4406 = vset.pattern.permute.xlu1 %v4529_v3 }
  0x20   : > { %v704_v5 = vld [vmem:[%s4685_s24] sm:$0xff]   ;;  %s4702_s13 = scalar_lea.vmem %s5683_s10, %s4676_s17  ;;  %v4706_v7 = vld [vmem:[%s4685_s24 + $0xc] sm:$0xff]   ;;  %v3867_v14 = vld [vmem:[%s4685_s24 + $0x8] sm:$0xf]  ;;  %4407 = vset.pattern.permute.xlu0 %v4529_v3 }
  0x21   : > { %v673_v6 = vld [vmem:[%s4692_s16] sm:$0xff]   ;;  %v705_v8 = vunpack.c.l.bf16 %v704_v5  ;;  %v874_v10 = vunpack.c.h.bf16 %v704_v5  ;;  %v1222_v17 = vunpack.c.l.bf16 %v4706_v7  ;;  %v1048_v18 = vunpack.c.l.bf16 %v3867_v14  ;;  %v4746_v31 = vld [vmem:[%s4692_s16 + $0xc] sm:$0xff]   ;;  %v3866_v39 = vld [vmem:[%s4692_s16 + $0x8] sm:$0xf] }
  0x22   : > { %v674_v9 = vunpack.c.l.bf16 %v673_v6  ;;  %v841_v11 = vunpack.c.h.bf16 %v673_v6  ;;  %v4709_v12 = vld [vmem:[%s4702_s13 + $0x4] sm:$0xff]   ;;  %v642_v13 = vld [vmem:[%s4702_s13] sm:$0xf]  ;;  %v1189_v42 = vunpack.c.l.bf16 %v4746_v31  ;;  %v4774_v43 = vld [vmem:[%s4702_s13 + $0xc] sm:$0xff]   ;;  %v1015_v52 = vunpack.c.l.bf16 %v3866_v39 }
  0x23   : > { %v808_v15 = vunpack.c.l.bf16 %v4709_v12  ;;  %v643_v16 = vunpack.c.l.bf16 %v642_v13  ;;  %v716_v19 = vsel %vm653_vm1, %v705_v8, %v4621_v1  ;;  %v886_v21 = vsel %vm653_vm1, %v874_v10, %v4621_v1  ;;  %v4786_v47 = vld [vmem:[%s4685_s24 + $0x14] sm:$0xff]  }
  0x24   : > { %v685_v20 = vsel %vm653_vm1, %v674_v9, %v4621_v1  ;;  %v853_v22 = vsel %vm653_vm1, %v841_v11, %v4621_v1  ;;  %v720_v23 = vsel %vm719_vm0, %v716_v19, %v4621_v1  ;;  %v775_v24 = vsel %vm719_vm0, %v4621_v1, %v716_v19  ;;  %v4811_v59 = vld [vmem:[%s4692_s16 + $0x14] sm:$0xff]   ;;  %v4855_v19 = vld [vmem:[%s4692_s16 + $0x1c] sm:$0xff]  }
  0x25   : > { %v689_v25 = vsel %vm688_vm2, %v685_v20, %v4621_v1  ;;  %v769_v26 = vsel %vm688_vm2, %v4621_v1, %v685_v20  ;;  %v4211_v27 = vpack.i.bf16 %v775_v24, %v720_v23  ;;  %v890_v29 = vsel %vm719_vm0, %v886_v21, %v4621_v1  ;;  %v4824_v6 = vld [vmem:[%s4702_s13 + $0x14] sm:$0xff]  }
  0x26   : > { %v4221_v28 = vpack.i.bf16 %v769_v26, %v689_v25  ;;  %v949_v30 = vsel %vm719_vm0, %v4621_v1, %v886_v21  ;;  %v857_v33 = vsel %vm688_vm2, %v853_v22, %v4621_v1  ;;  %v942_v34 = vsel %vm688_vm2, %v4621_v1, %v853_v22 }
  0x27   : > { %v4216_v32 = vpack.i.bf16 %v949_v30, %v890_v29  ;;  %v820_v35 = vsel %vm653_vm1, %v808_v15, %v4621_v1  ;;  %4212 = vrot.lane.b32.xlu0 %v4211_v27, %s4525_s26  ;;  %v4226_v36 = vpack.i.bf16 %v942_v34, %v857_v33  ;;  %v654_v40 = vsel %vm653_vm1, %v643_v16, %v4621_v1 }
  0x28   : > { %4222 = vrot.lane.b32.xlu1 %v4221_v28, %s4526_s27  ;;  %v824_v37 = vsel %vm657_vm3, %v820_v35, %v4621_v1  ;;  %v935_v38 = vsel %vm657_vm3, %v4621_v1, %v820_v35  ;;  %v1234_v41 = vsel %vm653_vm1, %v1222_v17, %v4621_v1  ;;  %v658_v44 = vsel %vm657_vm3, %v654_v40, %v4621_v1 }
  0x29   : > { %v763_v45 = vsel %vm657_vm3, %v4621_v1, %v654_v40  ;;  %v1060_v46 = vsel %vm653_vm1, %v1048_v18, %v4621_v1  ;;  %v4236_v48 = vpack.i.bf16 %v935_v38, %v824_v37  ;;  %v1238_v50 = vsel %vm719_vm0, %v1234_v41, %v4621_v1 }
  0x2a   : > { %v4231_v49 = vpack.i.bf16 %v763_v45, %v658_v44  ;;  %v1297_v51 = vsel %vm719_vm0, %v4621_v1, %v1234_v41  ;;  %v1064_v53 = vsel %vm719_vm0, %v1060_v46, %v4621_v1  ;;  %v1123_v54 = vsel %vm719_vm0, %v4621_v1, %v1060_v46  ;;  %v4901_v41 = vld [vmem:[%s4702_s13 + $0x1c] sm:$0xff]   ;;  %v4916_v46 = vld [vmem:[%s4685_s24 + $0x24] sm:$0xff]  }
  0x2b   : > { %4217 = vrot.lane.b32.xlu0 %v4216_v32, %s4525_s26  ;;  %v1201_v55 = vsel %vm653_vm1, %v1189_v42, %v4621_v1  ;;  %v1156_v56 = vunpack.c.l.bf16 %v4774_v43  ;;  %v1027_v57 = vsel %vm653_vm1, %v1015_v52, %v4621_v1  ;;  %v982_v58 = vunpack.c.h.bf16 %v4709_v12 }
  0x2c   : > { %4227 = vrot.lane.b32.xlu1 %v4226_v36, %s4526_s27  ;;  %v4246_v60 = vpack.i.bf16 %v1297_v51, %v1238_v50  ;;  %v1570_v61 = vunpack.c.l.bf16 %v4786_v47  ;;  %v4241_v62 = vpack.i.bf16 %v1123_v54, %v1064_v53  ;;  %v1205_v63 = vsel %vm688_vm2, %v1201_v55, %v4621_v1 }
  0x2d   : > { %v1290_v0 = vsel %vm688_vm2, %v4621_v1, %v1201_v55  ;;  %v1396_v5 = vunpack.c.h.bf16 %v4706_v7  ;;  %v1031_v8 = vsel %vm688_vm2, %v1027_v57, %v4621_v1  ;;  %v1116_v9 = vsel %vm688_vm2, %v4621_v1, %v1027_v57  ;;  %v4839_v7 = vld [vmem:[%s4685_s24 + $0x1c] sm:$0xff]  }
  0x2e   : > { %v1168_v10 = vsel %vm653_vm1, %v1156_v56, %v4621_v1  ;;  %v994_v11 = vsel %vm653_vm1, %v982_v58, %v4621_v1  ;;  %v4256_v12 = vpack.i.bf16 %v1290_v0, %v1205_v63  ;;  %v1582_v13 = vsel %vm653_vm1, %v1570_v61, %v4621_v1  ;;  %v3894_v63 = vld [vmem:[%s4692_s16 + $0x24] sm:$0xff]  }
  0x2f   : > { %4232 = vrot.lane.b32.xlu0 %v4231_v49, %s5689_s18  ;;  %v1537_v14 = vunpack.c.l.bf16 %v4811_v59  ;;  %v4251_v15 = vpack.i.bf16 %v1116_v9, %v1031_v8  ;;  %v1172_v16 = vsel %vm657_vm3, %v1168_v10, %v4621_v1  ;;  %v1408_v17 = vsel %vm653_vm1, %v1396_v5, %v4621_v1 }
  0x30   : > { %4237 = vrot.lane.b32.xlu1 %v4236_v48, %s5689_s18  ;;  %v1363_v18 = vunpack.c.h.bf16 %v4746_v31  ;;  %v1283_v20 = vsel %vm657_vm3, %v4621_v1, %v1168_v10  ;;  %v998_v21 = vsel %vm657_vm3, %v994_v11, %v4621_v1  ;;  %v1109_v22 = vsel %vm657_vm3, %v4621_v1, %v994_v11 }
  0x31   : > { %v1504_v23 = vunpack.c.l.bf16 %v4824_v6  ;;  %v1586_v24 = vsel %vm719_vm0, %v1582_v13, %v4621_v1  ;;  %v1645_v25 = vsel %vm719_vm0, %v4621_v1, %v1582_v13  ;;  %v1330_v26 = vunpack.c.h.bf16 %v4774_v43 }
  0x32   : > { %v1412_v27 = vsel %vm719_vm0, %v1408_v17, %v4621_v1  ;;  %v1471_v28 = vsel %vm719_vm0, %v4621_v1, %v1408_v17  ;;  %v1549_v29 = vsel %vm653_vm1, %v1537_v14, %v4621_v1  ;;  %v1918_v30 = vunpack.c.l.bf16 %v4839_v7 }
  0x33   : > { %4242 = vrot.lane.b32.xlu0 %v4241_v62, %s4525_s26  ;;  %v4266_v31 = vpack.i.bf16 %v1283_v20, %v1172_v16  ;;  %v4261_v32 = vpack.i.bf16 %v1109_v22, %v998_v21  ;;  %v1375_v33 = vsel %vm653_vm1, %v1363_v18, %v4621_v1  ;;  %v1744_v34 = vunpack.c.h.bf16 %v4786_v47  ;;  %v4999_v21 = vld [vmem:[%s4702_s13 + $0x24] sm:$0xff]   ;;  %v3902_v22 = vld [vmem:[%s4692_s16 + $0x2c] sm:$0xff]   ;;  %s3992_s16 = sshll.u32 %s4644_s11, 4 }
  0x34   : > { %4247 = vrot.lane.b32.xlu1 %v4246_v60, %s4525_s26  ;;  %v1516_v35 = vsel %vm653_vm1, %v1504_v23, %v4621_v1  ;;  %v1885_v36 = vunpack.c.l.bf16 %v4855_v19  ;;  %v4276_v37 = vpack.i.bf16 %v1645_v25, %v1586_v24  ;;  %v4271_v38 = vpack.i.bf16 %v1471_v28, %v1412_v27 }
  0x35   : > { %v1553_v39 = vsel %vm688_vm2, %v1549_v29, %v4621_v1  ;;  %v1342_v40 = vsel %vm653_vm1, %v1330_v26, %v4621_v1  ;;  %v1638_v42 = vsel %vm688_vm2, %v4621_v1, %v1549_v29  ;;  %v1379_v43 = vsel %vm688_vm2, %v1375_v33, %v4621_v1 }
  0x36   : > { %v1464_v44 = vsel %vm688_vm2, %v4621_v1, %v1375_v33  ;;  %v1930_v45 = vsel %vm653_vm1, %v1918_v30, %v4621_v1  ;;  %v1520_v47 = vsel %vm657_vm3, %v1516_v35, %v4621_v1  ;;  %v1631_v48 = vsel %vm657_vm3, %v4621_v1, %v1516_v35 }
  0x37   : > { %4252 = vrot.lane.b32.xlu0 %v4251_v15, %s4526_s27  ;;  %v1756_v49 = vsel %vm653_vm1, %v1744_v34, %v4621_v1  ;;  %v1711_v50 = vunpack.c.h.bf16 %v4811_v59  ;;  %v1346_v51 = vsel %vm657_vm3, %v1342_v40, %v4621_v1  ;;  %v1457_v52 = vsel %vm657_vm3, %v4621_v1, %v1342_v40 }
  0x38   : > { %4257 = vrot.lane.b32.xlu1 %v4256_v12, %s4526_s27  ;;  %v1897_v53 = vsel %vm653_vm1, %v1885_v36, %v4621_v1  ;;  %v1852_v54 = vunpack.c.l.bf16 %v4901_v41  ;;  %v4943_v55 = vsel %vm719_vm0, %v1930_v45, %v4621_v1  ;;  %v4948_v56 = vsel %vm719_vm0, %v4621_v1, %v1930_v45 }
  0x39   : > { %v1678_v57 = vunpack.c.h.bf16 %v4824_v6  ;;  %v2266_v58 = vunpack.c.l.bf16 %v4916_v46  ;;  %v4286_v59 = vpack.i.bf16 %v1638_v42, %v1553_v39  ;;  %v4281_v60 = vpack.i.bf16 %v1464_v44, %v1379_v43 }
  0x3a   : > { %v4955_v61 = vsel %vm719_vm0, %v1756_v49, %v4621_v1  ;;  %v1819_v62 = vsel %vm719_vm0, %v4621_v1, %v1756_v49  ;;  %v4966_v0 = vsel %vm688_vm2, %v1897_v53, %v4621_v1  ;;  %v4971_v5 = vsel %vm688_vm2, %v4621_v1, %v1897_v53 }
  0x3b   : > { %4262 = vrot.lane.b32.xlu0 %v4261_v32, %s5689_s18  ;;  %v1723_v6 = vsel %vm653_vm1, %v1711_v50, %v4621_v1  ;;  %v2726_v8 = vshrl.u32 %v650_v2, 7  ;;  %v4296_v9 = vpack.i.bf16 %v1631_v48, %v1520_v47  ;;  %v4291_v10 = vpack.i.bf16 %v1457_v52, %v1346_v51  ;;  %v5109_v50 = vld [vmem:[%s4685_s24 + $0x2c] sm:$0xff]  }
  0x3c   : > { %4267 = vrot.lane.b32.xlu1 %v4266_v31, %s5689_s18  ;;  %v4306_v11 = vpack.i.bf16 %v4948_v56, %v4943_v55  ;;  %v1864_v12 = vsel %vm653_vm1, %v1852_v54, %v4621_v1  ;;  %v1690_v13 = vsel %vm653_vm1, %v1678_v57, %v4621_v1  ;;  %v2278_v14 = vsel %vm653_vm1, %v2266_v58, %v4621_v1 }
  0x3d   : > { %v2092_v15 = vunpack.c.h.bf16 %v4839_v7  ;;  %v2233_v2 = vunpack.c.l.bf16 %v3894_v63  ;;  %v4301_v16 = vpack.i.bf16 %v1819_v62, %v4955_v61  ;;  %v4316_v17 = vpack.i.bf16 %v4971_v5, %v4966_v0 }
  0x3e   : > { %v4995_v18 = vsel %vm688_vm2, %v1723_v6, %v4621_v1  ;;  %v2059_v20 = vunpack.c.h.bf16 %v4855_v19  ;;  %v1812_v7 = vsel %vm688_vm2, %v4621_v1, %v1723_v6  ;;  %v5010_v23 = vsel %vm657_vm3, %v1864_v12, %v4621_v1 }
  0x3f   : > { %4272 = vrot.lane.b32.xlu0 %v4271_v38, %s4525_s26  ;;  %v5015_v19 = vsel %vm657_vm3, %v4621_v1, %v1864_v12  ;;  %v5017_v24 = vadd.s32 96, %v2726_v8  ;;  %v5022_v25 = vsel %vm657_vm3, %v1690_v13, %v4621_v1  ;;  %v5027_v26 = vsel %vm657_vm3, %v4621_v1, %v1690_v13  ;;  %v5167_v12 = vld [vmem:[%s4702_s13 + $0x2c] sm:$0xff]   ;;  %s5697_s13 = smov 108  }
  0x40   : > { %4277 = vrot.lane.b32.xlu1 %v4276_v37, %s4525_s26  ;;  %v5032_v27 = vsel %vm719_vm0, %v2278_v14, %v4621_v1  ;;  %v5037_v28 = vsel %vm719_vm0, %v4621_v1, %v2278_v14  ;;  %v2104_v29 = vsel %vm653_vm1, %v2092_v15, %v4621_v1  ;;  %v2245_v30 = vsel %vm653_vm1, %v2233_v2, %v4621_v1 }
  0x41   : > { %v2200_v31 = vunpack.c.l.bf16 %v4999_v21  ;;  %v2581_v32 = vunpack.c.l.bf16 %v3902_v22  ;;  %v4311_v33 = vpack.i.bf16 %v1812_v7, %v4995_v18  ;;  %v2071_v34 = vsel %vm653_vm1, %v2059_v20, %v4621_v1 }
  0x42   : > { %v2026_v35 = vunpack.c.h.bf16 %v4901_v41  ;;  %v2407_v36 = vunpack.c.h.bf16 %v3894_v63  ;;  %v4326_v37 = vpack.i.bf16 %v5015_v19, %v5010_v23  ;;  %v4321_v38 = vpack.i.bf16 %v5027_v26, %v5022_v25 }
  0x43   : > { %4282 = vrot.lane.b32.xlu0 %v4281_v60, %s4526_s27  ;;  %v4336_v39 = vpack.i.bf16 %v5037_v28, %v5032_v27  ;;  %vm2728_vm5 = vcmp.lt.s32.totalorder %v5017_v24, 100  ;;  %v5064_v40 = vsel %vm719_vm0, %v2104_v29, %v4621_v1  ;;  %v5069_v41 = vsel %vm719_vm0, %v4621_v1, %v2104_v29 }
  0x44   : > { %4287 = vrot.lane.b32.xlu1 %v4286_v59, %s4526_s27  ;;  %v5074_v42 = vsel %vm688_vm2, %v2245_v30, %v4621_v1  ;;  %v5079_v43 = vsel %vm688_vm2, %v4621_v1, %v2245_v30  ;;  %v5084_v44 = vsel %vm688_vm2, %v2071_v34, %v4621_v1  ;;  %v5089_v45 = vsel %vm688_vm2, %v4621_v1, %v2071_v34 }
  0x45   : > { %v2212_v47 = vsel %vm653_vm1, %v2200_v31, %v4621_v1  ;;  %v2593_v48 = vsel %vm653_vm1, %v2581_v32, %v4621_v1  ;;  %v5106_v49 = vsel %vm653_vm1, %v2026_v35, %v4621_v1  ;;  %v2419_v53 = vsel %vm653_vm1, %v2407_v36, %v4621_v1 }
  0x46   : > { %v5114_v51 = vsel %vm688_vm2, %v2593_v48, %v4621_v1  ;;  %v5119_v52 = vsel %vm688_vm2, %v4621_v1, %v2593_v48  ;;  %v5131_v55 = vsel %vm688_vm2, %v2419_v53, %v4621_v1  ;;  %v5136_v56 = vsel %vm688_vm2, %v4621_v1, %v2419_v53 }
  0x47   : > { %4292 = vrot.lane.b32.xlu0 %v4291_v10, %s5689_s18  ;;  %v4376_v54 = vpack.i.bf16 %v5119_v52, %v5114_v51  ;;  %v2788_v57 = vunpack.c.h.bf16 %v5109_v50  ;;  %v4331_v58 = vpack.i.bf16 %v5069_v41, %v5064_v40  ;;  %v4346_v59 = vpack.i.bf16 %v5079_v43, %v5074_v42  ;;  %v3032_v51 = vld [vmem:[%s5698_s1] sm:$0x3f] }
  0x48   : > { %4297 = vrot.lane.b32.xlu1 %v4296_v9, %s5689_s18  ;;  %s5101_s18 = scalar_lea.vmem %s5687_s14, %s4676_s17  ;;  %v4371_v60 = vpack.i.bf16 %v5136_v56, %v5131_v55  ;;  %v2755_v61 = vunpack.c.h.bf16 %v3902_v22  ;;  %v4341_v63 = vpack.i.bf16 %v5089_v45, %v5084_v44  ;;  %v5151_v6 = vsel %vm657_vm3, %v2212_v47, %v4621_v1  ;;  %s4535_s17 = smov 112  }
  0x49   : > { %v732_v62 = vld [vmem:[%s5101_s18] sm:$0xff]   ;;  %v2614_v8 = vunpack.c.l.bf16 %v5109_v50  ;;  %v2440_v9 = vunpack.c.h.bf16 %v4916_v46  ;;  %v5158_v10 = vsel %vm657_vm3, %v4621_v1, %v2212_v47  ;;  %v2795_v13 = vsel %vm2728_vm5, %v2788_v57, %v4621_v1  ;;  %v3872_v18 = vld [vmem:[%s5101_s18 + $0xc] sm:$0xff]   ;;  %v3868_v22 = vld [vmem:[%s5101_s18 + $0x8] sm:$0xf] }
  0x4a   : > { %v2762_v46 = vsel %vm2728_vm5, %v2755_v61, %v4621_v1  ;;  %v2800_v14 = vsel %vm653_vm1, %v2795_v13, %v4621_v1  ;;  %v2722_v2 = vunpack.c.h.bf16 %v5167_v12  ;;  %v3880_v7 = vld [vmem:[%s5101_s18 + $0x14] sm:$0xff]   ;;  %v904_v30 = vunpack.c.h.bf16 %v732_v62  ;;  %v3888_v32 = vld [vmem:[%s5101_s18 + $0x1c] sm:$0xff]   ;;  %v3896_v40 = vld [vmem:[%s5101_s18 + $0x24] sm:$0xff]  }
  0x4b   : > { %4302 = vrot.lane.b32.xlu0 %v4301_v16, %s4525_s26  ;;  %v2767_v15 = vsel %vm653_vm1, %v2762_v46, %v4621_v1  ;;  %v733_v16 = vunpack.c.l.bf16 %v732_v62  ;;  %v5191_v0 = vsel %vm719_vm0, %v2800_v14, %v4621_v1  ;;  %v5196_v5 = vsel %vm719_vm0, %v4621_v1, %v2800_v14 }
  0x4c   : > { %4307 = vrot.lane.b32.xlu1 %v4306_v11, %s4525_s26  ;;  %v5164_v11 = vsel %vm657_vm3, %v5106_v49, %v4621_v1  ;;  %v5206_v20 = vsel %vm688_vm2, %v4621_v1, %v2767_v15  ;;  %v4391_v23 = vpack.i.bf16 %v5196_v5, %v5191_v0  ;;  %v2729_v25 = vsel %vm2728_vm5, %v2722_v2, %v4621_v1 }
  0x4d   : > { %v5220_v26 = vsel %vm743_vm4, %v733_v16, %v4621_v1  ;;  %v2734_v29 = vsel %vm653_vm1, %v2729_v25, %v4621_v1  ;;  %v1252_v31 = vunpack.c.l.bf16 %v3872_v18  ;;  %v1078_v35 = vunpack.c.l.bf16 %v3868_v22 }
  0x4e   : > { %v5236_v34 = vsel %vm657_vm3, %v4621_v1, %v2734_v29  ;;  %v1600_v36 = vunpack.c.l.bf16 %v3880_v7  ;;  %v1426_v47 = vunpack.c.h.bf16 %v3872_v18  ;;  %v4528_v48 = vmov 0.0   ;;  %v3904_v18 = vld [vmem:[%s5101_s18 + $0x2c] sm:$0xff]   ;;  %s4533_s18 = smov 20  }
  0x4f   : > { %4312 = vrot.lane.b32.xlu0 %v4311_v33, %s4526_s27  ;;  %v5231_v33 = vsel %vm657_vm3, %v2734_v29, %v4621_v1  ;;  %4037 = vmatprep.subr.bf16.mxu1 %v4528_v48  ;;  %v5255_v50 = vsel %vm743_vm4, %v1078_v35, %v4621_v1  ;;  %v1948_v57 = vunpack.c.l.bf16 %v3888_v32  ;;  %v1774_v61 = vunpack.c.h.bf16 %v3880_v7 }
  0x50   : > { %4317 = vrot.lane.b32.xlu1 %v4316_v17, %s4526_s27  ;;  %v5201_v17 = vsel %vm688_vm2, %v2767_v15, %v4621_v1  ;;  %v4401_v41 = vpack.i.bf16 %v5236_v34, %v5231_v33  ;;  %v5260_v53 = vsel %vm743_vm4, %v1600_v36, %v4621_v1  ;;  %v5265_v62 = vsel %vm743_vm4, %v1426_v47, %v4621_v1 }
  0x51   : > { %v4396_v19 = vpack.i.bf16 %v5206_v20, %v5201_v17  ;;  %v2296_v13 = vunpack.c.l.bf16 %v3896_v40  ;;  %v2122_v46 = vunpack.c.h.bf16 %v3888_v32  ;;  %v2470_v14 = vunpack.c.h.bf16 %v3896_v40  ;;  %4043 = vmatprep.mubr.msk.bf16.mxu1 %vm4530_vm8, %v4528_v48 }
  0x52   : > { %v2153_v15 = vsel %vm657_vm3, %v4621_v1, %v5106_v49  ;;  %v5279_v2 = vsel %vm743_vm4, %v1948_v57, %v4621_v1  ;;  %v5284_v16 = vsel %vm743_vm4, %v1774_v61, %v4621_v1  ;;  %v2452_v22 = vsel %vm653_vm1, %v2440_v9, %v4621_v1 }
  0x53   : > { %4322 = vrot.lane.b32.xlu0 %v4321_v38, %s5697_s13  ;;  %v5249_v38 = vsel %vm743_vm4, %v1252_v31, %v4621_v1  ;;  %v5290_v27 = vsel %vm743_vm4, %v2296_v13, %v4621_v1  ;;  %v5295_v28 = vsel %vm743_vm4, %v2122_v46, %v4621_v1  ;;  %v5300_v49 = vsel %vm743_vm4, %v2470_v14, %v4621_v1 }
  0x54   : > { %4327 = vrot.lane.b32.xlu1 %v4326_v37, %s5697_s13  ;;  %v5244_v37 = vsel %vm743_vm4, %v904_v30, %v4621_v1  ;;  %v4351_v9 = vpack.i.bf16 %v2153_v15, %v5164_v11  ;;  %v2548_v25 = vunpack.c.l.bf16 %v5167_v12  ;;  %v2456_v43 = vsel %vm719_vm0, %v2452_v22, %v4621_v1 }
  0x55   : > { %v2515_v44 = vsel %vm719_vm0, %v4621_v1, %v2452_v22  ;;  %v2374_v45 = vunpack.c.h.bf16 %v4999_v21  ;;  %v2818_v11 = vunpack.c.h.bf16 %v3904_v18 }
  0x57   : > { %4332 = vrot.lane.b32.xlu0 %v4331_v58, %s4525_s26  ;;  %v2626_v58 = vsel %vm653_vm1, %v2614_v8, %v4621_v1  ;;  %v4356_v8 = vpack.i.bf16 %v5158_v10, %v5151_v6  ;;  %v2560_v6 = vsel %vm653_vm1, %v2548_v25, %v4621_v1  ;;  %v2386_v10 = vsel %vm653_vm1, %v2374_v45, %v4621_v1 }
  0x58   : > { %4337 = vrot.lane.b32.xlu1 %v4336_v39, %s4525_s26  ;;  %v2644_v39 = vunpack.c.l.bf16 %v3904_v18  ;;  %v2630_v29 = vsel %vm719_vm0, %v2626_v58, %v4621_v1  ;;  %v2689_v42 = vsel %vm719_vm0, %v4621_v1, %v2626_v58  ;;  %v2564_v21 = vsel %vm657_vm3, %v2560_v6, %v4621_v1 }
  0x59   : > { %v2824_v12 = vsel %vm2728_vm5, %v2818_v11, %v4621_v1  ;;  %v2675_v30 = vsel %vm657_vm3, %v4621_v1, %v2560_v6  ;;  %v2390_v4 = vsel %vm657_vm3, %v2386_v10, %v4621_v1  ;;  %v2501_v31 = vsel %vm657_vm3, %v4621_v1, %v2386_v10 }
  0x5a   : > { %v5311_v7 = vsel %vm743_vm4, %v2644_v39, %v4621_v1  ;;  %v5366_v32 = vsel %vm743_vm4, %v2824_v12, %v4621_v1  ;;  %v4386_v24 = vpack.i.bf16 %v2675_v30, %v2564_v21  ;;  %v4381_v33 = vpack.i.bf16 %v2501_v31, %v2390_v4 }
  0x5b   : > { %4342 = vrot.lane.b32.xlu0 %v4341_v63, %s4526_s27  ;;  %v4361_v63 = vpack.i.bf16 %v2515_v44, %v2456_v43 }
  0x5c   : > { %4347 = vrot.lane.b32.xlu1 %v4346_v59, %s4526_s27  ;;  %v4366_v59 = vpack.i.bf16 %v2689_v42, %v2630_v29 }
  0x5f   : > { %4352 = vrot.lane.b32.xlu0 %v4351_v9, %s5697_s13 }
  0x60   : > { %4357 = vrot.lane.b32.xlu1 %v4356_v8, %s5697_s13 }
  0x63   : > { %4362 = vrot.lane.b32.xlu0 %v4361_v63, %s4525_s26 }
  0x64   : > { %4367 = vrot.lane.b32.xlu1 %v4366_v59, %s4525_s26 }
  0x67   : > { %4372 = vrot.lane.b32.xlu0 %v4371_v60, %s4526_s27 }
  0x68   : > { %4377 = vrot.lane.b32.xlu1 %v4376_v54, %s4526_s27 }
  0x6b   : > { %4382 = vrot.lane.b32.xlu0 %v4381_v33, %s5697_s13 }
  0x6c   : > { %4387 = vrot.lane.b32.xlu1 %v4386_v24, %s5697_s13 }
  0x6f   : > { %4392 = vrot.lane.b32.xlu0 %v4391_v23, %s4525_s26  ;;  %s4531_s26 = smov 56  }
  0x70   : > { %4397 = vrot.lane.b32.xlu1 %v4396_v19, %s4526_s27  ;;  %s4532_s27 = smov 92  }
  0x73   : > { %4402 = vrot.lane.b32.xlu0 %v4401_v41, %s5697_s13  ;;  %s4534_s13 = smov 96  }
  0x74   : > { %3035 = vperm.xlu1 %4406, %v3032_v51  }
  0x99   : > { %v4213_v52 = vpop.permute.xlu0 %4212 }
  0x9a   : > { %v4223_v54 = vpop.permute.xlu1 %4222  ;;  %v4215_v55 = vunpack.i.h.bf16 %v4213_v52  ;;  %v4214_v56 = vunpack.i.l.bf16 %v4213_v52 }
  0x9b   : > { %v4225_v5 = vunpack.i.h.bf16 %v4223_v54  ;;  %v4224_v17 = vunpack.i.l.bf16 %v4223_v54 }
  0x9c   : > { %v780_v19 = vmax.f32 %v4621_v1, %v4215_v55  ;;  %v747_v34 = vmax.f32 %v5220_v26, %v4214_v56 }
  0x9d   : > { %v4218_v60 = vpop.permute.xlu0 %4217 }
  0x9e   : > { %v4228_v0 = vpop.permute.xlu1 %4227  ;;  %v4220_v20 = vunpack.i.h.bf16 %v4218_v60  ;;  %v4219_v23 = vunpack.i.l.bf16 %v4218_v60  ;;  %v784_v15 = vmax.f32 %v780_v19, %v4225_v5  ;;  %v751_v18 = vmax.f32 %v747_v34, %v4224_v17 }
  0x9f   : > { %v4230_v35 = vunpack.i.h.bf16 %v4228_v0  ;;  %v4229_v36 = vunpack.i.l.bf16 %v4228_v0 }
  0xa0   : > { %v954_v40 = vmax.f32 %v4621_v1, %v4220_v20  ;;  %v918_v41 = vmax.f32 %v5244_v37, %v4219_v23 }
  0xa1   : > { %v4233_v57 = vpop.permute.xlu0 %4232 }
  0xa2   : > { %v4238_v47 = vpop.permute.xlu1 %4237  ;;  %v958_v61 = vmax.f32 %v954_v40, %v4230_v35  ;;  %v922_v13 = vmax.f32 %v918_v41, %v4229_v36  ;;  %v4235_v39 = vunpack.i.h.bf16 %v4233_v57  ;;  %v4234_v58 = vunpack.i.l.bf16 %v4233_v57 }
  0xa3   : > { %v4240_v46 = vunpack.i.h.bf16 %v4238_v47  ;;  %v4239_v14 = vunpack.i.l.bf16 %v4238_v47 }
  0xa4   : > { %v788_v9 = vmax.f32 %v784_v15, %v4235_v39  ;;  %v755_v26 = vmax.f32 %v751_v18, %v4234_v58 }
  0xa5   : > { %v962_v22 = vmax.f32 %v958_v61, %v4240_v46  ;;  %v926_v8 = vmax.f32 %v922_v13, %v4239_v14  ;;  %v4243_v29 = vpop.permute.xlu0 %4242 }
  0xa6   : > { %v4248_v25 = vpop.permute.xlu1 %4247  ;;  %v791_v45 = vpack.c.bf16 %v4528_v48, %v788_v9  ;;  %v757_v59 = vpack.c.bf16 %v4528_v48, %v755_v26  ;;  %v4245_v63 = vunpack.i.h.bf16 %v4243_v29  ;;  %v4244_v6 = vunpack.i.l.bf16 %v4243_v29 }
  0xa7   : > { %v965_v42 = vpack.c.bf16 %v4528_v48, %v962_v22  ;;  %v929_v37 = vpack.c.bf16 %v4528_v48, %v926_v8  ;;  %v4250_v43 = vunpack.i.h.bf16 %v4248_v25  ;;  %v4249_v44 = vunpack.i.l.bf16 %v4248_v25 }
  0xa8   : > { %793 = vst [vmem:[#allocation24 + $0x4] sm:$0xf] %v791_v45  ;;  %759 = vst [vmem:[#allocation24] sm:$0xf] %v757_v59  ;;  %v1128_v33 = vmax.f32 %v4621_v1, %v4245_v63  ;;  %v1092_v3 = vmax.f32 %v5255_v50, %v4244_v6 }
  0xa9   : > { %967 = vst [vmem:[#allocation24 + $0xc] sm:$0xf] %v965_v42  ;;  %931 = vst [vmem:[#allocation24 + $0x8] sm:$0xf] %v929_v37  ;;  %v1302_v10 = vmax.f32 %v4621_v1, %v4250_v43  ;;  %v1266_v11 = vmax.f32 %v5249_v38, %v4249_v44  ;;  %v4253_v12 = vpop.permute.xlu0 %4252 }
  0xaa   : > { %v4258_v21 = vpop.permute.xlu1 %4257  ;;  %v4255_v31 = vunpack.i.h.bf16 %v4253_v12  ;;  %v4254_v24 = vunpack.i.l.bf16 %v4253_v12 }
  0xab   : > { %v4260_v30 = vunpack.i.h.bf16 %v4258_v21  ;;  %v4259_v4 = vunpack.i.l.bf16 %v4258_v21 }
  0xac   : > { %v1096_v54 = vmax.f32 %v1092_v3, %v4254_v24  ;;  %v1132_v55 = vmax.f32 %v1128_v33, %v4255_v31 }
  0xad   : > { %v1270_v51 = vmax.f32 %v1266_v11, %v4259_v4  ;;  %v1306_v52 = vmax.f32 %v1302_v10, %v4260_v30  ;;  %v4263_v60 = vpop.permute.xlu0 %4262 }
  0xae   : > { %v4268_v56 = vpop.permute.xlu1 %4267  ;;  %v4265_v17 = vunpack.i.h.bf16 %v4263_v60  ;;  %v4264_v38 = vunpack.i.l.bf16 %v4263_v60 }
  0xaf   : > { %v4270_v0 = vunpack.i.h.bf16 %v4268_v56  ;;  %v4269_v5 = vunpack.i.l.bf16 %v4268_v56 }
  0xb0   : > { %v1100_v19 = vmax.f32 %v1096_v54, %v4264_v38  ;;  %v1136_v34 = vmax.f32 %v1132_v55, %v4265_v17  ;;  %v4408_v35 = vld [vmem:[#allocation24 + $0x4] ss:$8 sps:$4 sm:$0xff]   ;;  %v4410_v36 = vld [vmem:[#allocation24] ss:$8 sps:$4 sm:$0xff]  }
  0xb1   : > { %v1274_v20 = vmax.f32 %v1270_v51, %v4269_v5  ;;  %v1310_v23 = vmax.f32 %v1306_v52, %v4270_v0  ;;  %v4273_v41 = vpop.permute.xlu0 %4272  ;;  %2973 = vmatprep.subr.bf16.mxu0 %v4408_v35 }
  0xb2   : > { %v4278_v40 = vpop.permute.xlu1 %4277  ;;  %v1103_v57 = vpack.c.bf16 %v4528_v48, %v1100_v19  ;;  %v1139_v61 = vpack.c.bf16 %v4528_v48, %v1136_v34  ;;  %v4275_v14 = vunpack.i.h.bf16 %v4273_v41  ;;  %v4274_v15 = vunpack.i.l.bf16 %v4273_v41  ;;  %2974 = vmatpush1.bf16.msra.mxu0 %v4410_v36 }
  0xb3   : > { %v1277_v50 = vpack.c.bf16 %v4528_v48, %v1274_v20  ;;  %v1313_v47 = vpack.c.bf16 %v4528_v48, %v1310_v23  ;;  %v4280_v13 = vunpack.i.h.bf16 %v4278_v40  ;;  %v4279_v46 = vunpack.i.l.bf16 %v4278_v40 }
  0xb4   : > { %1105 = vst [vmem:[#allocation24 + $0x10] sm:$0xf] %v1103_v57  ;;  %1141 = vst [vmem:[#allocation24 + $0x14] sm:$0xf] %v1139_v61  ;;  %v1476_v29 = vmax.f32 %v4621_v1, %v4275_v14  ;;  %v1440_v42 = vmax.f32 %v5265_v62, %v4274_v15 }
  0xb5   : > { %1279 = vst [vmem:[#allocation24 + $0x18] sm:$0xf] %v1277_v50  ;;  %1315 = vst [vmem:[#allocation24 + $0x1c] sm:$0xf] %v1313_v47  ;;  %v1650_v18 = vmax.f32 %v4621_v1, %v4280_v13  ;;  %v1614_v39 = vmax.f32 %v5260_v53, %v4279_v46  ;;  %v4283_v22 = vpop.permute.xlu0 %4282 }
  0xb6   : > { %v4288_v58 = vpop.permute.xlu1 %4287  ;;  %v4285_v26 = vunpack.i.h.bf16 %v4283_v22  ;;  %v4284_v25 = vunpack.i.l.bf16 %v4283_v22 }
  0xb7   : > { %v4290_v8 = vunpack.i.h.bf16 %v4288_v58  ;;  %v4289_v9 = vunpack.i.l.bf16 %v4288_v58 }
  0xb8   : > { %v1444_v44 = vmax.f32 %v1440_v42, %v4284_v25  ;;  %v1480_v45 = vmax.f32 %v1476_v29, %v4285_v26 }
  0xb9   : > { %v1618_v37 = vmax.f32 %v1614_v39, %v4289_v9  ;;  %v1654_v43 = vmax.f32 %v1650_v18, %v4290_v8  ;;  %v4293_v63 = vpop.permute.xlu0 %4292 }
  0xba   : > { %v4298_v59 = vpop.permute.xlu1 %4297  ;;  %v4295_v11 = vunpack.i.h.bf16 %v4293_v63  ;;  %v4294_v53 = vunpack.i.l.bf16 %v4293_v63 }
  0xbb   : > { %v4300_v6 = vunpack.i.h.bf16 %v4298_v59  ;;  %v4299_v10 = vunpack.i.l.bf16 %v4298_v59 }
  0xbc   : > { %v4411_v21 = vld [vmem:[#allocation24 + $0x14] ss:$8 sps:$4 sm:$0xff]   ;;  %v1448_v4 = vmax.f32 %v1444_v44, %v4294_v53  ;;  %v1484_v31 = vmax.f32 %v1480_v45, %v4295_v11  ;;  %v4413_v24 = vld [vmem:[#allocation24 + $0x10] ss:$8 sps:$4 sm:$0xff]  }
  0xbd   : > { %v1622_v12 = vmax.f32 %v1618_v37, %v4299_v10  ;;  %v1658_v30 = vmax.f32 %v1654_v43, %v4300_v6  ;;  %v4303_v3 = vpop.permute.xlu0 %4302  ;;  %2975 = vmatprep.subr.bf16.mxu0 %v4411_v21 }
  0xbe   : > { %v4308_v33 = vpop.permute.xlu1 %4307  ;;  %v1451_v52 = vpack.c.bf16 %v4528_v48, %v1448_v4  ;;  %v1487_v54 = vpack.c.bf16 %v4528_v48, %v1484_v31  ;;  %2976 = vmatpush1.bf16.msra.mxu0 %v4413_v24  ;;  %v4305_v60 = vunpack.i.h.bf16 %v4303_v3  ;;  %v4304_v0 = vunpack.i.l.bf16 %v4303_v3 }
  0xbf   : > { %v1625_v62 = vpack.c.bf16 %v4528_v48, %v1622_v12  ;;  %v1661_v51 = vpack.c.bf16 %v4528_v48, %v1658_v30  ;;  %v4310_v55 = vunpack.i.h.bf16 %v4308_v33  ;;  %v4309_v56 = vunpack.i.l.bf16 %v4308_v33 }
  0xc0   : > { %1453 = vst [vmem:[#allocation24 + $0x20] sm:$0xf] %v1451_v52  ;;  %1489 = vst [vmem:[#allocation24 + $0x24] sm:$0xf] %v1487_v54  ;;  %v1824_v36 = vmax.f32 %v4621_v1, %v4305_v60  ;;  %v1788_v40 = vmax.f32 %v5284_v16, %v4304_v0 }
  0xc1   : > { %1627 = vst [vmem:[#allocation24 + $0x28] sm:$0xf] %v1625_v62  ;;  %1663 = vst [vmem:[#allocation24 + $0x2c] sm:$0xf] %v1661_v51  ;;  %v1998_v5 = vmax.f32 %v4621_v1, %v4310_v55  ;;  %v1962_v17 = vmax.f32 %v5279_v2, %v4309_v56  ;;  %v4313_v20 = vpop.permute.xlu0 %4312 }
  0xc2   : > { %v4318_v38 = vpop.permute.xlu1 %4317  ;;  %v4315_v34 = vunpack.i.h.bf16 %v4313_v20  ;;  %v4314_v35 = vunpack.i.l.bf16 %v4313_v20 }
  0xc3   : > { %v4320_v23 = vunpack.i.h.bf16 %v4318_v38  ;;  %v4319_v19 = vunpack.i.l.bf16 %v4318_v38 }
  0xc4   : > { %v1792_v47 = vmax.f32 %v1788_v40, %v4314_v35  ;;  %v1828_v57 = vmax.f32 %v1824_v36, %v4315_v34 }
  0xc5   : > { %v1966_v41 = vmax.f32 %v1962_v17, %v4319_v19  ;;  %v2002_v50 = vmax.f32 %v1998_v5, %v4320_v23  ;;  %v4323_v13 = vpop.permute.xlu0 %4322 }
  0xc6   : > { %v4328_v61 = vpop.permute.xlu1 %4327  ;;  %v4325_v15 = vunpack.i.h.bf16 %v4323_v13  ;;  %v4324_v2 = vunpack.i.l.bf16 %v4323_v13 }
  0xc7   : > { %v4330_v46 = vunpack.i.h.bf16 %v4328_v61  ;;  %v4329_v14 = vunpack.i.l.bf16 %v4328_v61 }
  0xc8   : > { %v4414_v18 = vld [vmem:[#allocation24 + $0x24] ss:$8 sps:$4 sm:$0xff]   ;;  %v1796_v22 = vmax.f32 %v1792_v47, %v4324_v2  ;;  %v1832_v8 = vmax.f32 %v1828_v57, %v4325_v15  ;;  %v4416_v9 = vld [vmem:[#allocation24 + $0x20] ss:$8 sps:$4 sm:$0xff]  }
  0xc9   : > { %v1970_v39 = vmax.f32 %v1966_v41, %v4329_v14  ;;  %v2006_v58 = vmax.f32 %v2002_v50, %v4330_v46  ;;  %v4333_v25 = vpop.permute.xlu0 %4332  ;;  %2977 = vmatprep.subr.bf16.mxu0 %v4414_v18 }
  0xca   : > { %v4338_v26 = vpop.permute.xlu1 %4337  ;;  %v1799_v42 = vpack.c.bf16 %v4528_v48, %v1796_v22  ;;  %v1835_v37 = vpack.c.bf16 %v4528_v48, %v1832_v8  ;;  %2978 = vmatpush1.bf16.msra.mxu0 %v4416_v9  ;;  %v4335_v45 = vunpack.i.h.bf16 %v4333_v25  ;;  %v4334_v59 = vunpack.i.l.bf16 %v4333_v25 }
  0xcb   : > { %v1973_v16 = vpack.c.bf16 %v4528_v48, %v1970_v39  ;;  %v2009_v29 = vpack.c.bf16 %v4528_v48, %v2006_v58  ;;  %v4340_v43 = vunpack.i.h.bf16 %v4338_v26  ;;  %v4339_v44 = vunpack.i.l.bf16 %v4338_v26 }
  0xcc   : > { %1801 = vst [vmem:[#allocation24 + $0x30] sm:$0xf] %v1799_v42  ;;  %1837 = vst [vmem:[#allocation24 + $0x34] sm:$0xf] %v1835_v37  ;;  %v2172_v4 = vmax.f32 %v4621_v1, %v4335_v45  ;;  %v2136_v31 = vmax.f32 %v5295_v28, %v4334_v59 }
  0xcd   : > { %1975 = vst [vmem:[#allocation24 + $0x38] sm:$0xf] %v1973_v16  ;;  %2011 = vst [vmem:[#allocation24 + $0x3c] sm:$0xf] %v2009_v29  ;;  %v2346_v63 = vmax.f32 %v4621_v1, %v4340_v43  ;;  %v2310_v6 = vmax.f32 %v5290_v27, %v4339_v44  ;;  %v4343_v11 = vpop.permute.xlu0 %4342 }
  0xce   : > { %v4348_v10 = vpop.permute.xlu1 %4347  ;;  %v4345_v12 = vunpack.i.h.bf16 %v4343_v11  ;;  %v4344_v30 = vunpack.i.l.bf16 %v4343_v11 }
  0xcf   : > { %v4350_v53 = vunpack.i.h.bf16 %v4348_v10  ;;  %v4349_v21 = vunpack.i.l.bf16 %v4348_v10 }
  0xd0   : > { %v2140_v3 = vmax.f32 %v2136_v31, %v4344_v30  ;;  %v2176_v62 = vmax.f32 %v2172_v4, %v4345_v12 }
  0xd1   : > { %v2314_v24 = vmax.f32 %v2310_v6, %v4349_v21  ;;  %v2350_v33 = vmax.f32 %v2346_v63, %v4350_v53  ;;  %v4353_v52 = vpop.permute.xlu0 %4352 }
  0xd2   : > { %v4358_v51 = vpop.permute.xlu1 %4357  ;;  %v4355_v56 = vunpack.i.h.bf16 %v4353_v52  ;;  %v4354_v27 = vunpack.i.l.bf16 %v4353_v52 }
  0xd3   : > { %v4360_v54 = vunpack.i.h.bf16 %v4358_v51  ;;  %v4359_v55 = vunpack.i.l.bf16 %v4358_v51 }
  0xd4   : > { %v4417_v60 = vld [vmem:[#allocation24 + $0x34] ss:$8 sps:$4 sm:$0xff]   ;;  %v2144_v17 = vmax.f32 %v2140_v3, %v4354_v27  ;;  %v2180_v38 = vmax.f32 %v2176_v62, %v4355_v56  ;;  %v4419_v20 = vld [vmem:[#allocation24 + $0x30] ss:$8 sps:$4 sm:$0xff]  }
  0xd5   : > { %v2318_v0 = vmax.f32 %v2314_v24, %v4359_v55  ;;  %v2354_v5 = vmax.f32 %v2350_v33, %v4360_v54  ;;  %v4363_v19 = vpop.permute.xlu0 %4362  ;;  %2979 = vmatprep.subr.bf16.mxu0 %v4417_v60 }
  0xd6   : > { %v4368_v23 = vpop.permute.xlu1 %4367  ;;  %v2147_v35 = vpack.c.bf16 %v4528_v48, %v2144_v17  ;;  %v2183_v36 = vpack.c.bf16 %v4528_v48, %v2180_v38  ;;  %2980 = vmatpush1.bf16.msra.mxu0 %v4419_v20  ;;  %v4365_v50 = vunpack.i.h.bf16 %v4363_v19  ;;  %v4364_v47 = vunpack.i.l.bf16 %v4363_v19  ;;  %v2883_v19 = vld [vmem:[%s5699_s0] sm:$0x7]  ;;  %s5631_s0 = scalar_lea.hbm %s5688_s15, %s3992_s16 }
  0xd7   : > { %v2321_v28 = vpack.c.bf16 %v4528_v48, %v2318_v0  ;;  %v2357_v34 = vpack.c.bf16 %v4528_v48, %v2354_v5  ;;  %v4370_v40 = vunpack.i.h.bf16 %v4368_v23  ;;  %v4369_v41 = vunpack.i.l.bf16 %v4368_v23 }
  0xd8   : > { %2149 = vst [vmem:[#allocation24 + $0x40] sm:$0xf] %v2147_v35  ;;  %2185 = vst [vmem:[#allocation24 + $0x44] sm:$0xf] %v2183_v36  ;;  %v2520_v39 = vmax.f32 %v4621_v1, %v4365_v50  ;;  %v2484_v58 = vmax.f32 %v5300_v49, %v4364_v47 }
  0xd9   : > { %2323 = vst [vmem:[#allocation24 + $0x48] sm:$0xf] %v2321_v28  ;;  %2359 = vst [vmem:[#allocation24 + $0x4c] sm:$0xf] %v2357_v34  ;;  %v2694_v57 = vmax.f32 %v4621_v1, %v4370_v40  ;;  %v2658_v61 = vmax.f32 %v5311_v7, %v4369_v41  ;;  %v4373_v46 = vpop.permute.xlu0 %4372  ;;  %v4428_v28 = vld [vmem:[%s5675_s2 + $0x14] sm:$0xff]   ;;  %v4429_v34 = vld [vmem:[%s5675_s2 + $0x1c] sm:$0xff]  }
  0xda   : > { %v4378_v13 = vpop.permute.xlu1 %4377  ;;  %v4375_v2 = vunpack.i.h.bf16 %v4373_v46  ;;  %v4374_v18 = vunpack.i.l.bf16 %v4373_v46  ;;  %4038 = vmatpush3.bf16.msra.mxu1 %v4428_v28  ;;  %v4430_v35 = vld [vmem:[%s5675_s2 + $0x24] ss:$0 sps:$4 sm:$0x33]  }
  0xdb   : > { %v4380_v14 = vunpack.i.h.bf16 %v4378_v13  ;;  %v4379_v15 = vunpack.i.l.bf16 %v4378_v13  ;;  %4039 = vmatprep.subr.bf16.mxu1 %v4528_v48  ;;  %v3075_v36 = vsel %vm2966_vm6, %v4430_v35, 0 }
  0xdc   : > { %v2488_v9 = vmax.f32 %v2484_v58, %v4374_v18  ;;  %v2524_v26 = vmax.f32 %v2520_v39, %v4375_v2 }
  0xdd   : > { %v2662_v22 = vmax.f32 %v2658_v61, %v4379_v15  ;;  %v2698_v8 = vmax.f32 %v2694_v57, %v4380_v14  ;;  %v4383_v16 = vpop.permute.xlu0 %4382 }
  0xde   : > { %v4388_v25 = vpop.permute.xlu1 %4387  ;;  %v4385_v37 = vunpack.i.h.bf16 %v4383_v16  ;;  %v4384_v7 = vunpack.i.l.bf16 %v4383_v16  ;;  %4040 = vmatpush3.bf16.msra.mxu1 %v4429_v34  ;;  %v4433_v16 = vld [vmem:[%s5675_s2 + $0x10] ss:$0 sps:$4 sm:$0x33]  }
  0xdf   : > { %v4390_v29 = vunpack.i.h.bf16 %v4388_v25  ;;  %v4389_v42 = vunpack.i.l.bf16 %v4388_v25  ;;  %4041 = vmatprep.subr.bf16.mxu1 %v4528_v48  ;;  %v4432_v25 = vld [vmem:[%s5675_s2 + $0x8] sm:$0xff]  }
  0xe0   : > { %v4420_v43 = vld [vmem:[#allocation24 + $0x44] ss:$8 sps:$4 sm:$0xff]   ;;  %v2492_v59 = vmax.f32 %v2488_v9, %v4384_v7  ;;  %v2528_v63 = vmax.f32 %v2524_v26, %v4385_v37  ;;  %v4422_v6 = vld [vmem:[#allocation24 + $0x40] ss:$8 sps:$4 sm:$0xff]  }
  0xe1   : > { %v2666_v44 = vmax.f32 %v2662_v22, %v4389_v42  ;;  %v2702_v45 = vmax.f32 %v2698_v8, %v4390_v29  ;;  %v4393_v10 = vpop.permute.xlu0 %4392  ;;  %2981 = vmatprep.subr.bf16.mxu0 %v4420_v43  ;;  %v4431_v9 = vld [vmem:[%s5675_s2] sm:$0xff]   ;;  %v3135_v29 = vsel %vm2966_vm6, %v4433_v16, 0  ;;  %v4434_v42 = vld [vmem:[%s5675_s2 + $0x28] sm:$0xff]   ;;  %v4435_v37 = vld [vmem:[%s5675_s2 + $0x30] sm:$0xff]  }
  0xe2   : > { %v4398_v11 = vpop.permute.xlu1 %4397  ;;  %v2495_v21 = vpack.c.bf16 %v4528_v48, %v2492_v59  ;;  %v2531_v12 = vpack.c.bf16 %v4528_v48, %v2528_v63  ;;  %2982 = vmatpush1.bf16.msra.mxu0 %v4422_v6  ;;  %v4395_v30 = vunpack.i.h.bf16 %v4393_v10  ;;  %v4394_v4 = vunpack.i.l.bf16 %v4393_v10  ;;  %4042 = vmatpush3.bf16.msra.mxu1 %v3075_v36  ;;  %v4436_v7 = vld [vmem:[%s5675_s2 + $0x38] ss:$0 sps:$4 sm:$0x33]   ;;  %v4438_v59 = vld [vmem:[%s5675_s2 + $0x44] sm:$0xff]   ;;  %v4440_v10 = vld [vmem:[%s5675_s2 + $0x50] sm:$0xff]  }
  0xe3   : > { %v2669_v49 = vpack.c.bf16 %v4528_v48, %v2666_v44  ;;  %v2705_v53 = vpack.c.bf16 %v4528_v48, %v2702_v45  ;;  %v4400_v31 = vunpack.i.h.bf16 %v4398_v11  ;;  %v4399_v24 = vunpack.i.l.bf16 %v4398_v11  ;;  %4047 = vmatprep.subr.bf16.mxu1 %v4528_v48  ;;  %v4437_v44 = vld [vmem:[%s5675_s2 + $0x3c] sm:$0xff]   ;;  %v4439_v63 = vld [vmem:[%s5675_s2 + $0x4c] ss:$0 sps:$4 sm:$0x33]  }
  0xe4   : > { %2497 = vst [vmem:[#allocation24 + $0x50] sm:$0xf] %v2495_v21  ;;  %2533 = vst [vmem:[#allocation24 + $0x54] sm:$0xf] %v2531_v12  ;;  %v2868_v33 = vmax.f32 %v4621_v1, %v4395_v30  ;;  %v2832_v3 = vmax.f32 %v5366_v32, %v4394_v4  ;;  %v3204_v43 = vsel %vm2966_vm6, %v4436_v7, 0  ;;  %v3273_v6 = vsel %vm2966_vm6, %v4439_v63, 0 }
  0xe5   : > { %2671 = vst [vmem:[#allocation24 + $0x58] sm:$0xf] %v2669_v49  ;;  %2707 = vst [vmem:[#allocation24 + $0x5c] sm:$0xf] %v2705_v53  ;;  %v4403_v62 = vpop.permute.xlu0 %4402  ;;  %v4441_v49 = vld [vmem:[%s5675_s2 + $0x58] sm:$0xff]   ;;  %v4443_v12 = vld [vmem:[%s5675_s2 + $0x64] sm:$0xff]  }
  0xe6   : > { %v4405_v51 = vunpack.i.h.bf16 %v4403_v62  ;;  %v4404_v52 = vunpack.i.l.bf16 %v4403_v62  ;;  %v2836_v54 = vmax.f32 %v2832_v3, %v4399_v24  ;;  %v2872_v55 = vmax.f32 %v2868_v33, %v4400_v31  ;;  %v4442_v53 = vld [vmem:[%s5675_s2 + $0x60] ss:$0 sps:$4 sm:$0x33]   ;;  %v4444_v4 = vld [vmem:[%s5675_s2 + $0x6c] sm:$0xff]  }
  0xe7   : > { %v3342_v21 = vsel %vm2966_vm6, %v4442_v53, 0  ;;  %v4445_v31 = vld [vmem:[%s5675_s2 + $0x74] ss:$0 sps:$4 sm:$0x33]   ;;  %v4446_v3 = vld [vmem:[%s5677_s4] sm:$0xff]  }
  0xe8   : > { %v2840_v56 = vmax.f32 %v2836_v54, %v4404_v52  ;;  %v2876_v27 = vmax.f32 %v2872_v55, %v4405_v51  ;;  %v3411_v24 = vsel %vm2966_vm6, %v4445_v31, 0  ;;  %v4447_v51 = vld [vmem:[%s5679_s6] sm:$0xff]   ;;  %v4448_v55 = vld [vmem:[%s5679_s6 + $0x8] sm:$0xff]  }
  0xea   : > { %v2843_v60 = vpack.c.bf16 %v4528_v48, %v2840_v56  ;;  %v2879_v0 = vpack.c.bf16 %v4528_v48, %v2876_v27  ;;  %v4449_v27 = vld [vmem:[%s5679_s6 + $0x10] sm:$0xff]  }
  0xec   : > { %v4423_v5 = vld [vmem:[#allocation24 + $0x54] ss:$8 sps:$4 sm:$0xff]   ;;  %v4425_v17 = vld [vmem:[#allocation24 + $0x50] ss:$8 sps:$4 sm:$0xff]   ;;  %2845 = vst [vmem:[#allocation24 + $0x60] sm:$0xf] %v2843_v60 }
  0xed   : > { %2881 = vst [vmem:[#allocation24 + $0x64] sm:$0xf] %v2879_v0  ;;  %2983 = vmatprep.subr.bf16.mxu0 %v4423_v5  ;;  %v4450_v60 = vld [vmem:[%s5679_s6 + $0x18] sm:$0xff]   ;;  %v4451_v0 = vld [vmem:[%s5679_s6 + $0x20] sm:$0xff]   ;;  %v4452_v5 = vld [vmem:[%s5679_s6 + $0x28] sm:$0xff]  }
  0xee   : > { %2984 = vmatpush1.bf16.msra.mxu0 %v4425_v17 }
  0xf3   : > { %v3036_v57 = vpop.permute.xlu1 %3035 }
  0xf4   : > { %v2896_v38 = vld [vmem:[#allocation24 + $0x60] sm:$0x33] }
  0xf5   : > { %v3922_v32 = vcombine.high %v2896_v38, %v2896_v38  ;;  %v3921_v20 = vcombine.low %v2896_v38, %v2896_v38 }
  0xf7   : > { %3923 = vmatprep.subr.msk.bf16.mxu0 %vm2966_vm6, %v3922_v32  ;;  %v2968_v23 = vsel %vm2966_vm6, %v3921_v20, 0 }
  0xf8   : > { %2986 = vmatpush1.bf16.msra.mxu0 %v2968_v23  ;;  %v3467_v23 = vld [vmem:[%s5676_s3] sm:$0x1] }
  0xf9   : > { %4103 = vmatprep.subr.bf16.mxu0 %v4528_v48 }
  0xfb   : > { %3924 = vmatmul.mubr.msk.bf16.vlgmr.msra.gmra.mrb[0].mxu0 %vm2962_vm7, %v2883_v19 }
  0xfc   : > { %4119 = vmatprep.mubr.msk.bf16.mxu0 %vm4530_vm8, %v4528_v48  ;;  %4104 = vmatpush3.bf16.msra.mxu0 %v4447_v51 }
  0xfd   : > { %4105 = vmatprep.subr.bf16.mxu0 %v4528_v48 }
 0x100   : > { %4106 = vmatpush3.bf16.msra.mxu0 %v4448_v55 }
 0x101   : > { %4107 = vmatprep.subr.bf16.mxu0 %v4528_v48 }
 0x104   : > { %4108 = vmatpush3.bf16.msra.mxu0 %v4449_v27 }
 0x105   : > { %4109 = vmatprep.subr.bf16.mxu0 %v4528_v48 }
 0x108   : > { %4110 = vmatpush3.bf16.msra.mxu0 %v4450_v60 }
 0x109   : > { %4111 = vmatprep.subr.bf16.mxu0 %v4528_v48 }
 0x10c   : > { %4112 = vmatpush3.bf16.msra.mxu0 %v4451_v0 }
 0x10d   : > { %4113 = vmatprep.subr.bf16.mxu0 %v4528_v48 }
 0x110   : > { %4114 = vmatpush3.bf16.msra.mxu0 %v4452_v5 }
 0x111   : > { %4115 = vmatprep.subr.bf16.mxu0 %v4528_v48 }
 0x1ce   : > { %v3007_v40 = vpop.f32.mrb[0].mxu0 }
 0x1cf   : > { %3019 = vrot.lane.b32.xlu1 %v3007_v40, %s4531_s26  ;;  %3015 = vrot.lane.b32.xlu0 %v3007_v40, %s4532_s27  ;;  %v3009_v41 = vpop.f32.mrb[1].mxu0  ;;  %s4536_s27 = smov 80   ;;  %s581_s26 = sand.u32 1, %s4515_s21  }
 0x1d0   : > { %v3011_v50 = vpop.f32.mrb[2].mxu0  ;;  %s582_s19 = scalar_lea.vmem [#allocation22], %s581_s26  ;;  %s3732_s11 = scalar_lea.sflag [#allocation23], %s581_s26 }
 0x1d1   : > { %v3012_v47 = vpop.f32.mrb[3].mxu0 }
 0x1d2   : > { %v3473_v47 = vld [vmem:[%s5678_s5] sm:$0x1] }
 0x1d3   : > { %3024 = vrot.lane.b32.xlu0 %v3007_v40, %s4533_s18  ;;  %3026 = vrot.lane.b32.xlu1 %v3009_v41, %s4533_s18  ;;  %v4454_v41 = vld [vmem:[%s5679_s6 + $0x38] ss:$0 sps:$4 sm:$0xff]   ;;  %s4537_s18 = smov [#allocation22]  }
 0x1d4   : > { %v3593_v50 = vsel %vm3591_vm12, %v4454_v41, 0  ;;  %s4465_s1 = sshll.u32 %s4537_s18, 4  ;;  %s4466_s1 = int_to_ptr.vmem [resolvable:$false] %s4465_s1 }
 0x241   : > { %v3020_v61 = vpop.permute.xlu1 %3019  ;;  %v3016_v13 = vpop.permute.xlu0 %3015 }
 0x242   : > { %v3018_v46 = vmax.f32 %v3007_v40, %v3016_v13  ;;  %v4453_v40 = vld [vmem:[%s5679_s6 + $0x30] sm:$0xff]  }
 0x243   : > { %4116 = vmatpush3.bf16.msra.mxu0 %v4453_v40 }
 0x244   : > { %v3022_v14 = vmax.f32 %v3018_v46, %v3020_v61  ;;  %4117 = vmatprep.subr.bf16.mxu0 %v4528_v48 }
 0x245   : > { %v3025_v15 = vpop.permute.xlu0 %3024  ;;  %v3027_v2 = vpop.permute.xlu1 %3026 }
 0x246   : > { %v3029_v18 = vsel %vm3028_vm9, %v3025_v15, %v3027_v2  ;;  %v4455_v2 = vld [vmem:[%s5681_s8] sm:$0xff]  }
 0x247   : > { %v3031_v39 = vmax.f32 %v3022_v14, %v3029_v18  ;;  %4118 = vmatpush3.bf16.msra.mxu0 %v3593_v50 }
 0x248   : > { %4123 = vmatprep.subr.bf16.mxu0 %v4528_v48 }
 0x249   : > { %v3038_v58 = vadd.f32 %v3036_v57, %v3031_v39  ;;  %v4456_v39 = vld [vmem:[%s5681_s8 + $0x8] sm:$0xff]  }
 0x24b   : > { %v3039_v22 = vmax.f32 %v3038_v58, 0.0  ;;  %v4457_v58 = vld [vmem:[%s5681_s8 + $0x10] sm:$0xff]  }
 0x24d   : > { %v3040_v8 = vpack.c.bf16 %v3039_v22, %v3039_v22  ;;  %v4458_v22 = vld [vmem:[%s5681_s8 + $0x18] sm:$0xff]  }
 0x24f   : > { %v5468_v26 = vshrl.u32 %v3040_v8, 16  ;;  %v3184_v45 = vrot.slane %v3040_v8, 1  ;;  %v3322_v30 = vrot.slane %v3040_v8, 2 }
 0x251   : > { %4044 = vmatmul.mubr.msk.bf16.vlgmr.msra.gmra.mrb[0].mxu1 %vm3070_vm10, %v5468_v26  ;;  %v3253_v11 = vrot.slane %v5468_v26, 1  ;;  %v3391_v33 = vrot.slane %v5468_v26, 2 }
 0x252   : > { %4048 = vmatpush3.bf16.msra.mxu1 %v4431_v9  ;;  %4053 = vmatprep.mubr.msk.bf16.mxu1 %vm4530_vm8, %v4528_v48  ;;  %v4460_v9 = vld [vmem:[%s5681_s8 + $0x28] ss:$0 sps:$4 sm:$0x33]  }
 0x253   : > { %4049 = vmatprep.subr.bf16.mxu1 %v4528_v48  ;;  %v3687_v26 = vsel %vm2966_vm6, %v4460_v9, 0 }
 0x256   : > { %4050 = vmatpush3.bf16.msra.mxu1 %v4432_v25  ;;  %v3541_v25 = vld [vmem:[%s5680_s7] sm:$0x1] }
 0x257   : > { %4051 = vmatprep.subr.bf16.mxu1 %v4528_v48 }
 0x25a   : > { %4052 = vmatpush3.bf16.msra.mxu1 %v3135_v29 }
 0x25b   : > { %4057 = vmatprep.subr.bf16.mxu1 %v4528_v48 }
 0x25d   : > { %4054 = vmatmul.mubr.msk.bf16.vlgmr.msra.gmra.mrb[0].mxu1 %vm3070_vm10, %v3040_v8  ;;  %v4459_v8 = vld [vmem:[%s5681_s8 + $0x20] sm:$0xff]  }
 0x25e   : > { %4058 = vmatpush3.bf16.msra.mxu1 %v4434_v42  ;;  %4063 = vmatprep.mubr.msk.bf16.mxu1 %vm4530_vm8, %v4528_v48 }
 0x25f   : > { %4059 = vmatprep.subr.bf16.mxu1 %v4528_v48 }
 0x262   : > { %4060 = vmatpush3.bf16.msra.mxu1 %v4435_v37 }
 0x263   : > { %4061 = vmatprep.subr.bf16.mxu1 %v4528_v48 }
 0x266   : > { %4062 = vmatpush3.bf16.msra.mxu1 %v3204_v43 }
 0x267   : > { %4067 = vmatprep.subr.bf16.mxu1 %v4528_v48 }
 0x269   : > { %4064 = vmatmul.mubr.msk.bf16.vlgmr.msra.gmra.mrb[0].mxu1 %vm3070_vm10, %v3184_v45 }
 0x26a   : > { %4068 = vmatpush3.bf16.msra.mxu1 %v4437_v44  ;;  %4073 = vmatprep.mubr.msk.bf16.mxu1 %vm4530_vm8, %v4528_v48  ;;  %v3648_v44 = vld [vmem:[%s5682_s9] sm:$0x1] }
 0x26b   : > { %4069 = vmatprep.subr.bf16.mxu1 %v4528_v48 }
 0x26e   : > { %4070 = vmatpush3.bf16.msra.mxu1 %v4438_v59 }
 0x26f   : > { %4071 = vmatprep.subr.bf16.mxu1 %v4528_v48 }
 0x272   : > { %4072 = vmatpush3.bf16.msra.mxu1 %v3273_v6 }
 0x273   : > { %4077 = vmatprep.subr.bf16.mxu1 %v4528_v48 }
 0x275   : > { %4074 = vmatmul.mubr.msk.bf16.vlgmr.msra.gmra.mrb[0].mxu1 %vm3070_vm10, %v3253_v11 }
 0x276   : > { %4078 = vmatpush3.bf16.msra.mxu1 %v4440_v10  ;;  %4083 = vmatprep.mubr.msk.bf16.mxu1 %vm4530_vm8, %v4528_v48 }
 0x277   : > { %4079 = vmatprep.subr.bf16.mxu1 %v4528_v48 }
 0x27a   : > { %4080 = vmatpush3.bf16.msra.mxu1 %v4441_v49 }
 0x27b   : > { %4081 = vmatprep.subr.bf16.mxu1 %v4528_v48 }
 0x27e   : > { %4082 = vmatpush3.bf16.msra.mxu1 %v3342_v21 }
 0x27f   : > { %4087 = vmatprep.subr.bf16.mxu1 %v4528_v48 }
 0x281   : > { %4084 = vmatmul.mubr.msk.bf16.vlgmr.msra.gmra.mrb[0].mxu1 %vm3070_vm10, %v3322_v30 }
 0x282   : > { %4088 = vmatpush3.bf16.msra.mxu1 %v4443_v12  ;;  %4093 = vmatprep.mubr.msk.bf16.mxu1 %vm4530_vm8, %v4528_v48 }
 0x283   : > { %4089 = vmatprep.subr.bf16.mxu1 %v4528_v48 }
 0x286   : > { %4090 = vmatpush3.bf16.msra.mxu1 %v4444_v4 }
 0x287   : > { %4091 = vmatprep.subr.bf16.mxu1 %v4528_v48 }
 0x28a   : > { %4092 = vmatpush3.bf16.msra.mxu1 %v3411_v24 }
 0x28b   : > { %4097 = vmatprep.subr.bf16.mxu1 %v4528_v48 }
 0x28d   : > { %4094 = vmatmul.mubr.msk.bf16.vlgmr.msra.gmra.mrb[0].mxu1 %vm3070_vm10, %v3391_v33 }
 0x28e   : > { %4099 = vmatprep.mubr.msk.bf16.mxu1 %vm4530_vm8, %v4528_v48  ;;  %4098 = vmatpush3.bf16.msra.mxu1 %v4446_v3 }
 0x360   : > { %v3447_v62 = vpop.f32.mrb[0].mxu1 }
 0x361   : > { %3459 = vrot.lane.b32.xlu1 %v3447_v62, %s4534_s13  ;;  %3455 = vrot.lane.b32.xlu0 %v3447_v62, %s4535_s17  ;;  %v4095_v52 = vpop.f32.mrb[1].mxu1  ;;  %s3744_s13 = sshll.u32 %s582_s19, 4  ;;  %s4467_s17 = scalar_lea.vmem %s4466_s1, 32  ;;  %s5633_s13 = int_to_ptr.vmem [resolvable:$true] %s3744_s13 }
 0x362   : > { %v3450_v54 = vpop.f32.mrb[2].mxu1  ;;  %p4468_p0 = scmp.lt.s32.totalorder %s5633_s13, %s4466_s1 }
 0x363   : > { %v4096_v56 = vpop.f32.mrb[3].mxu1 }
 0x365   : > { %3463 = vrot.lane.b32.xlu0 %v3447_v62, %s4536_s27  ;;  %s4461_s27 = scalar_lea.vmem %s5633_s13, 16 }
 0x366   : > { %p4462_p11 = scmp.ne.s32.totalorder %s5633_s13, %s4461_s27  ;;  %p4469_p1 = scmp.lt.s32.totalorder %s4467_s17, %s4461_s27 }
 0x368   : > { %p4463_p12 = pnand %p4462_p11, %p4661_p5  ;;  %p4470_p2 = por %p4469_p1, %p4468_p0 }
 0x36a   : > { %p4464_p13 = pneg %p4463_p12 }
 0x36c   : > { %p4471_p3 = pnand %p4470_p2, %p4464_p13 }
 0x3d3   : > { %v3456_v17 = vpop.permute.xlu0 %3455  ;;  %v3460_v32 = vpop.permute.xlu1 %3459 }
 0x3d4   : > { %v3458_v38 = vmax.f32 %v3447_v62, %v3456_v17 }
 0x3d6   : > { %v3462_v20 = vmax.f32 %v3458_v38, %v3460_v32 }
 0x3d7   : > { %v3464_v19 = vpop.permute.xlu0 %3463 }
 0x3d8   : > { %v3466_v28 = vmax.f32 %v3462_v20, %v3464_v19 }
 0x3da   : > { %v3468_v34 = vadd.f32 %v3467_v23, %v3466_v28 }
 0x3dc   : > { %v3469_v35 = vmax.f32 %v3468_v34, 0.0 }
 0x3de   : > { %v3470_v36 = vpack.c.bf16 %v3469_v35, %v3469_v35 }
 0x3e0   : > { %4100 = vmatmul.mubr.msk.bf16.vlgmr.msra.gmra.mrb[4].mxu1 %vm3480_vm11, %v3470_v36 }
 0x4b3   : > { %v3518_v57 = vpop.f32.mrb[4].mxu1 }
 0x4b4   : > { %v3519_v61 = vadd.f32 %v3518_v57, %v3473_v47  ;;  %v4101_v13 = vpop.f32.mrb[5].mxu1 }
 0x4b5   : > { %v3521_v46 = vpop.f32.mrb[6].mxu1 }
 0x4b6   : > { %v3524_v14 = vmax.f32 %v3519_v61, 0.0  ;;  %v4102_v15 = vpop.f32.mrb[7].mxu1 }
 0x4b8   : > { %v3525_v18 = vpack.c.bf16 %v3524_v14, %v3524_v14 }
 0x4ba   : > { %4120 = vmatmul.mubr.msk.bf16.vlgmr.msra.gmra.mrb[4].mxu0 %vm3587_vm13, %v3525_v18 }
 0x4bb   : > { %4124 = vmatpush3.bf16.msra.mxu0 %v4455_v2  ;;  %4135 = vmatprep.mubr.msk.bf16.mxu0 %vm4530_vm8, %v4528_v48 }
 0x4bc   : > { %4125 = vmatprep.subr.bf16.mxu0 %v4528_v48 }
 0x4bf   : > { %4126 = vmatpush3.bf16.msra.mxu0 %v4456_v39 }
 0x4c0   : > { %4127 = vmatprep.subr.bf16.mxu0 %v4528_v48 }
 0x4c3   : > { %4128 = vmatpush3.bf16.msra.mxu0 %v4457_v58 }
 0x4c4   : > { %4129 = vmatprep.subr.bf16.mxu0 %v4528_v48 }
 0x4c7   : > { %4130 = vmatpush3.bf16.msra.mxu0 %v4458_v22 }
 0x4c8   : > { %4131 = vmatprep.subr.bf16.mxu0 %v4528_v48 }
 0x4cb   : > { %4132 = vmatpush3.bf16.msra.mxu0 %v4459_v8 }
 0x4cc   : > { %4133 = vmatprep.subr.bf16.mxu0 %v4528_v48 }
 0x4cf   : > { %4134 = vmatpush3.bf16.msra.mxu0 %v3687_v26 }
 0x58d   : > { %v3629_v16 = vpop.f32.mrb[4].mxu0 }
 0x58e   : > { %v3630_v29 = vadd.f32 %v3629_v16, %v3541_v25  ;;  %v4121_v42 = vpop.f32.mrb[5].mxu0 }
 0x58f   : > { %v3632_v37 = vpop.f32.mrb[6].mxu0 }
 0x590   : > { %v3635_v7 = vmax.f32 %v3630_v29, 0.0  ;;  %v4122_v43 = vpop.f32.mrb[7].mxu0 }
 0x592   : > { %v3636_v48 = vpack.c.bf16 %v3635_v7, %v3635_v7 }
 0x594   : > { %4136 = vmatmul.mubr.msk.bf16.vlgmr.msra.gmra.mrb[8].mxu0 %vm3682_vm14, %v3636_v48 }
 0x667   : > { %v3723_v45 = vpop.f32.mrb[8].mxu0 }
 0x668   : > { %v3724_v59 = vadd.f32 %v3723_v45, %v3648_v44  ;;  %v4137_v63 = vpop.f32.mrb[9].mxu0 }
 0x669   : > { %v3726_v6 = vpop.f32.mrb[10].mxu0 }
 0x66a   : > { %v4138_v10 = vpop.f32.mrb[11].mxu0  ;;  %3730 = vst.msk [vmem:[%s582_s19] sm:$0x1] %vm3729_vm15, %v3724_v59 }
 0x66b   : > { %4474 = shalt.err (!%p4471_p3)
}
 0x66c   : > { %s4475_s26 = scalar_lea.hbm %s5631_s0, 16  ;;  %s4479_s24 = scalar_lea.hbm %s5688_s15, 32 }
 0x66d   : > { %p4476_p4 = scmp.ne.s32.totalorder %s5631_s0, %s4475_s26  ;;  %p4480_p9 = scmp.lt.u32.totalorder %s5631_s0, %s5688_s15 }
 0x66e   : > { %p4481_p10 = scmp.lt.u32.totalorder %s4479_s24, %s4475_s26  ;;  %p4483_p12 = scmp.lt.u32.totalorder %s4475_s26, %s5631_s0 }
 0x66f   : > { %p4477_p7 = pnand %p4476_p4, %p4661_p5 }
 0x670   : > { %p4482_p11 = por %p4481_p10, %p4480_p9 }
 0x671   : > { %p4478_p8 = pneg %p4477_p7 }
 0x672   : > { %p4484_p13 = por %p4483_p12, %p4482_p11 }
 0x674   : > { %p4485_p0 = pnand %p4484_p13, %p4478_p8 }
 0x676   : > { %4488 = shalt.err (!%p4485_p0)
}
 0x677   : > { %4160 = dma.vmem_to_hbm [thread:$0]  (%p4661_p5), %s5633_s13, 16, %s5631_s0, %s3732_s11  }
 0x678 PF: > { %p4166_p1 = scmp.ge.s32.totalorder %s4523_s23, 2  ;;  %s3756_s27 = sand.u32 1, %s4511_s20  }
 0x679   : > { %s3757_s17 = scalar_lea.sflag [#allocation23], %s3756_s27 }
 0x67a   : > { %p4163_p2 = pnand %p4166_p1, %p4665_p6 }
 0x67c   : > { %4506 = dma.done.wait (!%p4163_p2), %s3757_s17, 16  }
 0x67d   : > { %4508 = vsyncadd (!%p4163_p2), %s3757_s17, 4294967280  ;;  %p45_p3 = scmp.ge.s32.totalorder %s4648_s25, 4   ;;  %s5700_s20 = smov %s4515_s21 }
 0x67e   : > { %s5701_s21 = smov %s4519_s22  ;;  %s5702_s22 = smov %s4659_s28 }
 0x67f   : > { %s5703_s23 = smov %s4648_s25  ;;  %47 = sbr.rel (!%p45_p3) target bundleno = 7 (0x7), region = 258 }
 0x686   :  { %3761 = vsyncpa [#allocation23], 1 }
 0x687   :  { %3763 = vsyncpa [#allocation23 + $0x1], 1 }

</bundles_post_ra>
